<compile_context>
chip_gen: v7x
topology: tpu7x:2x2x1
jax: 0.10.0
libtpu: 0.0.40
codegen_flags: <defaults>
</compile_context>

<pallas_src>
import functools

import jax
import jax.numpy as jnp
from jax.experimental import pallas as pl
from jax.experimental.pallas import tpu as pltpu


def _reattention_kernel(x_ref, wqkv_ref, wre_ref, gamma_ref, beta_ref,
                        wout_ref, bout_ref, o_ref,
                        *, heads, dim_head, scale, eps):
    """Fused ReAttention for one batch element (heads unrolled statically)."""
    N = x_ref.shape[1]
    D = x_ref.shape[2]
    HD = heads * dim_head

    x = x_ref[0]                                              # (N, D)

    # qkv projection: one lane-dense matmul, f32 accumulation on the MXU.
    qkv = jnp.dot(x, wqkv_ref[...],
                  preferred_element_type=jnp.float32)          # (N, 3*HD)

    # Per-head softmax(q k^T * scale). Slices are static and 128-aligned.
    attn = []
    for h in range(heads):
        q_h = qkv[:, h * dim_head:(h + 1) * dim_head]                      # (N, dh)
        k_h = qkv[:, HD + h * dim_head: HD + (h + 1) * dim_head]           # (N, dh)
        dots = jax.lax.dot_general(
            q_h, k_h, (((1,), (1,)), ((), ())),
            preferred_element_type=jnp.float32) * scale                    # (N, N)
        m = jnp.max(dots, axis=-1, keepdims=True)
        e = jnp.exp(dots - m)
        inv_den = 1.0 / jnp.sum(e, axis=-1, keepdims=True)                 # (N, 1)
        attn.append(e * inv_den)

    # Re-attention: mix attention maps across heads with learned (H, H) weights.
    # mixed[g](i,j) = sum_h attn[h](i,j) * W_re[h, g]   (scalars read from SMEM)
    mixed = []
    for g in range(heads):
        acc = attn[0] * wre_ref[0, g]
        for h in range(1, heads):
            acc = acc + attn[h] * wre_ref[h, g]
        mixed.append(acc)

    # LayerNorm over the head axis at each (i, j)
    # (torch: 'b h i j -> b i j h', LayerNorm(heads), back).
    inv_h = 1.0 / heads
    mean = mixed[0]
    for g in range(1, heads):
        mean = mean + mixed[g]
    mean = mean * inv_h

    delta = [mixed[g] - mean for g in range(heads)]            # reused below
    var = delta[0] * delta[0]
    for g in range(1, heads):
        var = var + delta[g] * delta[g]
    var = var * inv_h
    rstd = jax.lax.rsqrt(var + eps)

    # attn @ v per head, fused with the output projection:
    #   concat_h(out_h) @ W_out == sum_h out_h @ W_out[h*dh:(h+1)*dh, :]
    y = jnp.zeros((N, D), dtype=jnp.float32)
    for g in range(heads):
        a_g = delta[g] * (rstd * gamma_ref[g]) + beta_ref[g]               # (N, N)
        v_g = qkv[:, 2 * HD + g * dim_head: 2 * HD + (g + 1) * dim_head]   # (N, dh)
        o_g = jnp.dot(a_g, v_g, preferred_element_type=jnp.float32)        # (N, dh)
        w_g = wout_ref[g * dim_head:(g + 1) * dim_head, :]                 # (dh, D)
        y = y + jnp.dot(o_g, w_g, preferred_element_type=jnp.float32)

    y = y + bout_ref[...]                                                  # (1, D) bcast
    # TODO(synk): nn.Dropout(p=0.0) in to_out is identity at inference; omitted.
    o_ref[0] = y.astype(o_ref.dtype)


def reattention(x, w_qkv, reattn_w, ln_gamma, ln_beta, w_out, b_out,
                *, heads, dim_head, eps=1e-5):
    """x: [B, N, D]; returns ReAttention(x) with the given synthetic params."""
    B, N, D = x.shape
    HD = heads * dim_head
    assert w_qkv.shape == (D, 3 * HD)
    assert w_out.shape == (HD, D)
    assert N % 8 == 0 and D % 128 == 0 and dim_head % 128 == 0, (
        "lane-dense layout expected: N % 8 == 0, D and dim_head multiples of 128")

    scale = float(dim_head) ** -0.5
    kernel = functools.partial(_reattention_kernel, heads=heads,
                               dim_head=dim_head, scale=scale, eps=eps)
    b_out2d = b_out.reshape(1, D)

    return pl.pallas_call(
        kernel,
        out_shape=jax.ShapeDtypeStruct((B, N, D), x.dtype),
        grid=(B,),
        in_specs=[
            pl.BlockSpec((1, N, D), lambda b: (b, 0, 0)),          # x (per batch)
            pl.BlockSpec((D, 3 * HD), lambda b: (0, 0)),           # W_qkv (resident)
            pl.BlockSpec(memory_space=pltpu.MemorySpace.SMEM),     # reattn (H, H)
            pl.BlockSpec(memory_space=pltpu.MemorySpace.SMEM),     # LN gamma (H,)
            pl.BlockSpec(memory_space=pltpu.MemorySpace.SMEM),     # LN beta  (H,)
            pl.BlockSpec((HD, D), lambda b: (0, 0)),               # W_out (resident)
            pl.BlockSpec((1, D), lambda b: (0, 0)),                # b_out
        ],
        out_specs=pl.BlockSpec((1, N, D), lambda b: (b, 0, 0)),
        compiler_params=pltpu.CompilerParams(
            dimension_semantics=("parallel",),
            vmem_limit_bytes=32 * 1024 * 1024,
        ),
    )(x, w_qkv, reattn_w, ln_gamma, ln_beta, w_out, b_out2d)


def _reference(x, w_qkv, reattn_w, ln_gamma, ln_beta, w_out, b_out,
               *, heads, dim_head, eps=1e-5):
    """Pure-JAX reference mirroring the PyTorch ReAttention forward."""
    B, N, D = x.shape
    HD = heads * dim_head
    scale = float(dim_head) ** -0.5
    qkv = jnp.einsum("bnd,de->bne", x, w_qkv)
    q, k, v = qkv[..., :HD], qkv[..., HD:2 * HD], qkv[..., 2 * HD:]

    def split(t):
        return t.reshape(B, N, heads, dim_head).transpose(0, 2, 1, 3)

    q, k, v = split(q), split(k), split(v)
    dots = jnp.einsum("bhid,bhjd->bhij", q, k) * scale
    attn = jax.nn.softmax(dots, axis=-1)
    attn = jnp.einsum("bhij,hg->bgij", attn, reattn_w)
    a = attn.transpose(0, 2, 3, 1)                       # b i j h
    mean = a.mean(-1, keepdims=True)
    var = ((a - mean) ** 2).mean(-1, keepdims=True)
    a = (a - mean) / jnp.sqrt(var + eps) * ln_gamma + ln_beta
    attn = a.transpose(0, 3, 1, 2)                       # b h i j
    out = jnp.einsum("bhij,bhjd->bhid", attn, v)
    out = out.transpose(0, 2, 1, 3).reshape(B, N, HD)
    return jnp.einsum("bne,ed->bnd", out, w_out) + b_out


if __name__ == "__main__":
    key = jax.random.PRNGKey(0)
    B, N, D = 2, 16, 128
    heads, dim_head = 4, 128          # inner_dim = 512, all lane-dense
    HD = heads * dim_head

    keys = jax.random.split(key, 7)
    x = jax.random.normal(keys[0], (B, N, D), dtype=jnp.float32)
    # Deterministic synthetic parameters (no checkpoint load).
    w_qkv = jax.random.normal(keys[1], (D, 3 * HD), dtype=jnp.float32) * 0.05
    reattn_w = jax.random.normal(keys[2], (heads, heads), dtype=jnp.float32)
    ln_gamma = 1.0 + 0.1 * jax.random.normal(keys[3], (heads,), dtype=jnp.float32)
    ln_beta = 0.1 * jax.random.normal(keys[4], (heads,), dtype=jnp.float32)
    w_out = jax.random.normal(keys[5], (HD, D), dtype=jnp.float32) * 0.05
    b_out = jax.random.normal(keys[6], (D,), dtype=jnp.float32) * 0.01

    out = reattention(x, w_qkv, reattn_w, ln_gamma, ln_beta, w_out, b_out,
                      heads=heads, dim_head=dim_head)
    out = jax.block_until_ready(out)

    ref = _reference(x, w_qkv, reattn_w, ln_gamma, ln_beta, w_out, b_out,
                     heads=heads, dim_head=dim_head)
    assert out.shape == x.shape and out.dtype == x.dtype
    assert jnp.allclose(out, ref, atol=1e-4, rtol=1e-4), "mismatch vs reference"

    print("KERNEL_OK")
</pallas_src>

<mosaic_0001>
module attributes {stable_mosaic.version = 11 : i64} {
  func.func @_reattention_kernel(%arg0: i32, %arg1: memref<1x16x128xf32, #tpu.memory_space<vmem>>, %arg2: memref<128x1536xf32, #tpu.memory_space<vmem>>, %arg3: memref<4x4xf32, #tpu.memory_space<smem>>, %arg4: memref<4xf32, #tpu.memory_space<smem>>, %arg5: memref<4xf32, #tpu.memory_space<smem>>, %arg6: memref<512x128xf32, #tpu.memory_space<vmem>>, %arg7: memref<1x128xf32, #tpu.memory_space<vmem>>, %arg8: memref<1x16x128xf32, #tpu.memory_space<vmem>>) attributes {dimension_semantics = [#tpu.dimension_semantics<parallel>], iteration_bounds = array<i64: 2>, scalar_prefetch = 0 : i64, scratch_operands = 0 : i64, tpu.core_type = #tpu.core_type<tc>, window_params = [{transform_indices = @transform_0, window_bounds = array<i64: 1, 16, 128>}, {pipeline_mode = #tpu.pipeline_mode<synchronous>, transform_indices = @transform_1, window_bounds = array<i64: 128, 1536>}, {transform_indices = @transform_2, window_bounds = array<i64: 4, 4>}, {transform_indices = @transform_3, window_bounds = array<i64: 4>}, {transform_indices = @transform_4, window_bounds = array<i64: 4>}, {pipeline_mode = #tpu.pipeline_mode<synchronous>, transform_indices = @transform_5, window_bounds = array<i64: 512, 128>}, {pipeline_mode = #tpu.pipeline_mode<synchronous>, transform_indices = @transform_6, window_bounds = array<i64: 1, 128>}, {transform_indices = @transform_7, window_bounds = array<i64: 1, 16, 128>}]} {
    %c0 = arith.constant 0 : index
    %c0_0 = arith.constant 0 : index
    %c0_1 = arith.constant 0 : index
    %0 = vector.load %arg1[%c0, %c0_0, %c0_1] : memref<1x16x128xf32, #tpu.memory_space<vmem>>, vector<1x16x128xf32>
    %1 = vector.shape_cast %0 : vector<1x16x128xf32> to vector<16x128xf32>
    %c0_2 = arith.constant 0 : index
    %c0_3 = arith.constant 0 : index
    %2 = vector.load %arg2[%c0_2, %c0_3] : memref<128x1536xf32, #tpu.memory_space<vmem>>, vector<128x1536xf32>
    %cst = arith.constant dense<0.000000e+00> : vector<16x1536xf32>
    %3 = tpu.matmul %1, %2, %cst {dimension_numbers = #tpu.dot_dimension_numbers<[1], [0], [0], [1], [0, 0, 1, 1], [], []>} : vector<16x128xf32>, vector<128x1536xf32>, vector<16x1536xf32> -> vector<16x1536xf32>
    %4 = vector.extract_strided_slice %3 {offsets = [0, 0], sizes = [16, 128], strides = [1, 1]} : vector<16x1536xf32> to vector<16x128xf32>
    %5 = vector.extract_strided_slice %3 {offsets = [0, 512], sizes = [16, 128], strides = [1, 1]} : vector<16x1536xf32> to vector<16x128xf32>
    %cst_4 = arith.constant dense<0.000000e+00> : vector<16x16xf32>
    %6 = tpu.matmul %4, %5, %cst_4 {dimension_numbers = #tpu.dot_dimension_numbers<[1], [1], [0], [0], [0, 0, 1, 0], [], []>} : vector<16x128xf32>, vector<16x128xf32>, vector<16x16xf32> -> vector<16x16xf32>
    %cst_5 = arith.constant 0.0883883461 : f32
    %7 = vector.broadcast %cst_5 : f32 to vector<16x16xf32>
    %8 = arith.mulf %6, %7 : vector<16x16xf32>
    %cst_6 = arith.constant dense<0xFF800000> : vector<16xf32>
    %9 = vector.multi_reduction <maximumf>, %8, %cst_6 [1] : vector<16x16xf32> to vector<16xf32>
    %10 = vector.shape_cast %9 : vector<16xf32> to vector<16x1xf32>
    %11 = vector.broadcast %10 : vector<16x1xf32> to vector<16x16xf32>
    %12 = arith.subf %8, %11 : vector<16x16xf32>
    %13 = math.exp %12 : vector<16x16xf32>
    %cst_7 = arith.constant dense<0.000000e+00> : vector<16xf32>
    %14 = vector.multi_reduction <add>, %13, %cst_7 [1] : vector<16x16xf32> to vector<16xf32>
    %15 = vector.shape_cast %14 : vector<16xf32> to vector<16x1xf32>
    %cst_8 = arith.constant 1.000000e+00 : f32
    %16 = vector.broadcast %cst_8 : f32 to vector<16x1xf32>
    %17 = arith.divf %16, %15 : vector<16x1xf32>
    %18 = vector.broadcast %17 : vector<16x1xf32> to vector<16x16xf32>
    %19 = arith.mulf %13, %18 : vector<16x16xf32>
    %20 = vector.extract_strided_slice %3 {offsets = [0, 128], sizes = [16, 128], strides = [1, 1]} : vector<16x1536xf32> to vector<16x128xf32>
    %21 = vector.extract_strided_slice %3 {offsets = [0, 640], sizes = [16, 128], strides = [1, 1]} : vector<16x1536xf32> to vector<16x128xf32>
    %cst_9 = arith.constant dense<0.000000e+00> : vector<16x16xf32>
    %22 = tpu.matmul %20, %21, %cst_9 {dimension_numbers = #tpu.dot_dimension_numbers<[1], [1], [0], [0], [0, 0, 1, 0], [], []>} : vector<16x128xf32>, vector<16x128xf32>, vector<16x16xf32> -> vector<16x16xf32>
    %cst_10 = arith.constant 0.0883883461 : f32
    %23 = vector.broadcast %cst_10 : f32 to vector<16x16xf32>
    %24 = arith.mulf %22, %23 : vector<16x16xf32>
    %cst_11 = arith.constant dense<0xFF800000> : vector<16xf32>
    %25 = vector.multi_reduction <maximumf>, %24, %cst_11 [1] : vector<16x16xf32> to vector<16xf32>
    %26 = vector.shape_cast %25 : vector<16xf32> to vector<16x1xf32>
    %27 = vector.broadcast %26 : vector<16x1xf32> to vector<16x16xf32>
    %28 = arith.subf %24, %27 : vector<16x16xf32>
    %29 = math.exp %28 : vector<16x16xf32>
    %cst_12 = arith.constant dense<0.000000e+00> : vector<16xf32>
    %30 = vector.multi_reduction <add>, %29, %cst_12 [1] : vector<16x16xf32> to vector<16xf32>
    %31 = vector.shape_cast %30 : vector<16xf32> to vector<16x1xf32>
    %cst_13 = arith.constant 1.000000e+00 : f32
    %32 = vector.broadcast %cst_13 : f32 to vector<16x1xf32>
    %33 = arith.divf %32, %31 : vector<16x1xf32>
    %34 = vector.broadcast %33 : vector<16x1xf32> to vector<16x16xf32>
    %35 = arith.mulf %29, %34 : vector<16x16xf32>
    %36 = vector.extract_strided_slice %3 {offsets = [0, 256], sizes = [16, 128], strides = [1, 1]} : vector<16x1536xf32> to vector<16x128xf32>
    %37 = vector.extract_strided_slice %3 {offsets = [0, 768], sizes = [16, 128], strides = [1, 1]} : vector<16x1536xf32> to vector<16x128xf32>
    %cst_14 = arith.constant dense<0.000000e+00> : vector<16x16xf32>
    %38 = tpu.matmul %36, %37, %cst_14 {dimension_numbers = #tpu.dot_dimension_numbers<[1], [1], [0], [0], [0, 0, 1, 0], [], []>} : vector<16x128xf32>, vector<16x128xf32>, vector<16x16xf32> -> vector<16x16xf32>
    %cst_15 = arith.constant 0.0883883461 : f32
    %39 = vector.broadcast %cst_15 : f32 to vector<16x16xf32>
    %40 = arith.mulf %38, %39 : vector<16x16xf32>
    %cst_16 = arith.constant dense<0xFF800000> : vector<16xf32>
    %41 = vector.multi_reduction <maximumf>, %40, %cst_16 [1] : vector<16x16xf32> to vector<16xf32>
    %42 = vector.shape_cast %41 : vector<16xf32> to vector<16x1xf32>
    %43 = vector.broadcast %42 : vector<16x1xf32> to vector<16x16xf32>
    %44 = arith.subf %40, %43 : vector<16x16xf32>
    %45 = math.exp %44 : vector<16x16xf32>
    %cst_17 = arith.constant dense<0.000000e+00> : vector<16xf32>
    %46 = vector.multi_reduction <add>, %45, %cst_17 [1] : vector<16x16xf32> to vector<16xf32>
    %47 = vector.shape_cast %46 : vector<16xf32> to vector<16x1xf32>
    %cst_18 = arith.constant 1.000000e+00 : f32
    %48 = vector.broadcast %cst_18 : f32 to vector<16x1xf32>
    %49 = arith.divf %48, %47 : vector<16x1xf32>
    %50 = vector.broadcast %49 : vector<16x1xf32> to vector<16x16xf32>
    %51 = arith.mulf %45, %50 : vector<16x16xf32>
    %52 = vector.extract_strided_slice %3 {offsets = [0, 384], sizes = [16, 128], strides = [1, 1]} : vector<16x1536xf32> to vector<16x128xf32>
    %53 = vector.extract_strided_slice %3 {offsets = [0, 896], sizes = [16, 128], strides = [1, 1]} : vector<16x1536xf32> to vector<16x128xf32>
    %cst_19 = arith.constant dense<0.000000e+00> : vector<16x16xf32>
    %54 = tpu.matmul %52, %53, %cst_19 {dimension_numbers = #tpu.dot_dimension_numbers<[1], [1], [0], [0], [0, 0, 1, 0], [], []>} : vector<16x128xf32>, vector<16x128xf32>, vector<16x16xf32> -> vector<16x16xf32>
    %cst_20 = arith.constant 0.0883883461 : f32
    %55 = vector.broadcast %cst_20 : f32 to vector<16x16xf32>
    %56 = arith.mulf %54, %55 : vector<16x16xf32>
    %cst_21 = arith.constant dense<0xFF800000> : vector<16xf32>
    %57 = vector.multi_reduction <maximumf>, %56, %cst_21 [1] : vector<16x16xf32> to vector<16xf32>
    %58 = vector.shape_cast %57 : vector<16xf32> to vector<16x1xf32>
    %59 = vector.broadcast %58 : vector<16x1xf32> to vector<16x16xf32>
    %60 = arith.subf %56, %59 : vector<16x16xf32>
    %61 = math.exp %60 : vector<16x16xf32>
    %cst_22 = arith.constant dense<0.000000e+00> : vector<16xf32>
    %62 = vector.multi_reduction <add>, %61, %cst_22 [1] : vector<16x16xf32> to vector<16xf32>
    %63 = vector.shape_cast %62 : vector<16xf32> to vector<16x1xf32>
    %cst_23 = arith.constant 1.000000e+00 : f32
    %64 = vector.broadcast %cst_23 : f32 to vector<16x1xf32>
    %65 = arith.divf %64, %63 : vector<16x1xf32>
    %66 = vector.broadcast %65 : vector<16x1xf32> to vector<16x16xf32>
    %67 = arith.mulf %61, %66 : vector<16x16xf32>
    %c0_24 = arith.constant 0 : index
    %c0_25 = arith.constant 0 : index
    %68 = memref.load %arg3[%c0_24, %c0_25] : memref<4x4xf32, #tpu.memory_space<smem>>
    %69 = vector.broadcast %68 : f32 to vector<16x16xf32>
    %70 = arith.mulf %19, %69 : vector<16x16xf32>
    %c1 = arith.constant 1 : index
    %c0_26 = arith.constant 0 : index
    %71 = memref.load %arg3[%c1, %c0_26] : memref<4x4xf32, #tpu.memory_space<smem>>
    %72 = vector.broadcast %71 : f32 to vector<16x16xf32>
    %73 = arith.mulf %35, %72 : vector<16x16xf32>
    %74 = arith.addf %70, %73 : vector<16x16xf32>
    %c2 = arith.constant 2 : index
    %c0_27 = arith.constant 0 : index
    %75 = memref.load %arg3[%c2, %c0_27] : memref<4x4xf32, #tpu.memory_space<smem>>
    %76 = vector.broadcast %75 : f32 to vector<16x16xf32>
    %77 = arith.mulf %51, %76 : vector<16x16xf32>
    %78 = arith.addf %74, %77 : vector<16x16xf32>
    %c3 = arith.constant 3 : index
    %c0_28 = arith.constant 0 : index
    %79 = memref.load %arg3[%c3, %c0_28] : memref<4x4xf32, #tpu.memory_space<smem>>
    %80 = vector.broadcast %79 : f32 to vector<16x16xf32>
    %81 = arith.mulf %67, %80 : vector<16x16xf32>
    %82 = arith.addf %78, %81 : vector<16x16xf32>
    %c0_29 = arith.constant 0 : index
    %c1_30 = arith.constant 1 : index
    %83 = memref.load %arg3[%c0_29, %c1_30] : memref<4x4xf32, #tpu.memory_space<smem>>
    %84 = vector.broadcast %83 : f32 to vector<16x16xf32>
    %85 = arith.mulf %19, %84 : vector<16x16xf32>
    %c1_31 = arith.constant 1 : index
    %c1_32 = arith.constant 1 : index
    %86 = memref.load %arg3[%c1_31, %c1_32] : memref<4x4xf32, #tpu.memory_space<smem>>
    %87 = vector.broadcast %86 : f32 to vector<16x16xf32>
    %88 = arith.mulf %35, %87 : vector<16x16xf32>
    %89 = arith.addf %85, %88 : vector<16x16xf32>
    %c2_33 = arith.constant 2 : index
    %c1_34 = arith.constant 1 : index
    %90 = memref.load %arg3[%c2_33, %c1_34] : memref<4x4xf32, #tpu.memory_space<smem>>
    %91 = vector.broadcast %90 : f32 to vector<16x16xf32>
    %92 = arith.mulf %51, %91 : vector<16x16xf32>
    %93 = arith.addf %89, %92 : vector<16x16xf32>
    %c3_35 = arith.constant 3 : index
    %c1_36 = arith.constant 1 : index
    %94 = memref.load %arg3[%c3_35, %c1_36] : memref<4x4xf32, #tpu.memory_space<smem>>
    %95 = vector.broadcast %94 : f32 to vector<16x16xf32>
    %96 = arith.mulf %67, %95 : vector<16x16xf32>
    %97 = arith.addf %93, %96 : vector<16x16xf32>
    %c0_37 = arith.constant 0 : index
    %c2_38 = arith.constant 2 : index
    %98 = memref.load %arg3[%c0_37, %c2_38] : memref<4x4xf32, #tpu.memory_space<smem>>
    %99 = vector.broadcast %98 : f32 to vector<16x16xf32>
    %100 = arith.mulf %19, %99 : vector<16x16xf32>
    %c1_39 = arith.constant 1 : index
    %c2_40 = arith.constant 2 : index
    %101 = memref.load %arg3[%c1_39, %c2_40] : memref<4x4xf32, #tpu.memory_space<smem>>
    %102 = vector.broadcast %101 : f32 to vector<16x16xf32>
    %103 = arith.mulf %35, %102 : vector<16x16xf32>
    %104 = arith.addf %100, %103 : vector<16x16xf32>
    %c2_41 = arith.constant 2 : index
    %c2_42 = arith.constant 2 : index
    %105 = memref.load %arg3[%c2_41, %c2_42] : memref<4x4xf32, #tpu.memory_space<smem>>
    %106 = vector.broadcast %105 : f32 to vector<16x16xf32>
    %107 = arith.mulf %51, %106 : vector<16x16xf32>
    %108 = arith.addf %104, %107 : vector<16x16xf32>
    %c3_43 = arith.constant 3 : index
    %c2_44 = arith.constant 2 : index
    %109 = memref.load %arg3[%c3_43, %c2_44] : memref<4x4xf32, #tpu.memory_space<smem>>
    %110 = vector.broadcast %109 : f32 to vector<16x16xf32>
    %111 = arith.mulf %67, %110 : vector<16x16xf32>
    %112 = arith.addf %108, %111 : vector<16x16xf32>
    %c0_45 = arith.constant 0 : index
    %c3_46 = arith.constant 3 : index
    %113 = memref.load %arg3[%c0_45, %c3_46] : memref<4x4xf32, #tpu.memory_space<smem>>
    %114 = vector.broadcast %113 : f32 to vector<16x16xf32>
    %115 = arith.mulf %19, %114 : vector<16x16xf32>
    %c1_47 = arith.constant 1 : index
    %c3_48 = arith.constant 3 : index
    %116 = memref.load %arg3[%c1_47, %c3_48] : memref<4x4xf32, #tpu.memory_space<smem>>
    %117 = vector.broadcast %116 : f32 to vector<16x16xf32>
    %118 = arith.mulf %35, %117 : vector<16x16xf32>
    %119 = arith.addf %115, %118 : vector<16x16xf32>
    %c2_49 = arith.constant 2 : index
    %c3_50 = arith.constant 3 : index
    %120 = memref.load %arg3[%c2_49, %c3_50] : memref<4x4xf32, #tpu.memory_space<smem>>
    %121 = vector.broadcast %120 : f32 to vector<16x16xf32>
    %122 = arith.mulf %51, %121 : vector<16x16xf32>
    %123 = arith.addf %119, %122 : vector<16x16xf32>
    %c3_51 = arith.constant 3 : index
    %c3_52 = arith.constant 3 : index
    %124 = memref.load %arg3[%c3_51, %c3_52] : memref<4x4xf32, #tpu.memory_space<smem>>
    %125 = vector.broadcast %124 : f32 to vector<16x16xf32>
    %126 = arith.mulf %67, %125 : vector<16x16xf32>
    %127 = arith.addf %123, %126 : vector<16x16xf32>
    %128 = arith.addf %82, %97 : vector<16x16xf32>
    %129 = arith.addf %128, %112 : vector<16x16xf32>
    %130 = arith.addf %129, %127 : vector<16x16xf32>
    %cst_53 = arith.constant 2.500000e-01 : f32
    %131 = vector.broadcast %cst_53 : f32 to vector<16x16xf32>
    %132 = arith.mulf %130, %131 : vector<16x16xf32>
    %133 = arith.subf %82, %132 : vector<16x16xf32>
    %134 = arith.subf %97, %132 : vector<16x16xf32>
    %135 = arith.subf %112, %132 : vector<16x16xf32>
    %136 = arith.subf %127, %132 : vector<16x16xf32>
    %137 = arith.mulf %133, %133 : vector<16x16xf32>
    %138 = arith.mulf %134, %134 : vector<16x16xf32>
    %139 = arith.addf %137, %138 : vector<16x16xf32>
    %140 = arith.mulf %135, %135 : vector<16x16xf32>
    %141 = arith.addf %139, %140 : vector<16x16xf32>
    %142 = arith.mulf %136, %136 : vector<16x16xf32>
    %143 = arith.addf %141, %142 : vector<16x16xf32>
    %cst_54 = arith.constant 2.500000e-01 : f32
    %144 = vector.broadcast %cst_54 : f32 to vector<16x16xf32>
    %145 = arith.mulf %143, %144 : vector<16x16xf32>
    %cst_55 = arith.constant 9.99999974E-6 : f32
    %146 = vector.broadcast %cst_55 : f32 to vector<16x16xf32>
    %147 = arith.addf %145, %146 : vector<16x16xf32>
    %148 = math.rsqrt %147 : vector<16x16xf32>
    %cst_56 = arith.constant 0.000000e+00 : f32
    %149 = vector.broadcast %cst_56 : f32 to vector<16x128xf32>
    %c0_57 = arith.constant 0 : index
    %150 = memref.load %arg4[%c0_57] : memref<4xf32, #tpu.memory_space<smem>>
    %151 = vector.broadcast %150 : f32 to vector<16x16xf32>
    %152 = arith.mulf %148, %151 : vector<16x16xf32>
    %153 = arith.mulf %133, %152 : vector<16x16xf32>
    %c0_58 = arith.constant 0 : index
    %154 = memref.load %arg5[%c0_58] : memref<4xf32, #tpu.memory_space<smem>>
    %155 = vector.broadcast %154 : f32 to vector<16x16xf32>
    %156 = arith.addf %153, %155 : vector<16x16xf32>
    %157 = vector.extract_strided_slice %3 {offsets = [0, 1024], sizes = [16, 128], strides = [1, 1]} : vector<16x1536xf32> to vector<16x128xf32>
    %cst_59 = arith.constant dense<0.000000e+00> : vector<16x128xf32>
    %158 = tpu.matmul %156, %157, %cst_59 {dimension_numbers = #tpu.dot_dimension_numbers<[1], [0], [0], [1], [0, 0, 1, 1], [], []>} : vector<16x16xf32>, vector<16x128xf32>, vector<16x128xf32> -> vector<16x128xf32>
    %c0_60 = arith.constant 0 : index
    %c0_61 = arith.constant 0 : index
    %159 = vector.load %arg6[%c0_60, %c0_61] : memref<512x128xf32, #tpu.memory_space<vmem>>, vector<128x128xf32>
    %cst_62 = arith.constant dense<0.000000e+00> : vector<16x128xf32>
    %160 = tpu.matmul %158, %159, %cst_62 {dimension_numbers = #tpu.dot_dimension_numbers<[1], [0], [0], [1], [0, 0, 1, 1], [], []>} : vector<16x128xf32>, vector<128x128xf32>, vector<16x128xf32> -> vector<16x128xf32>
    %161 = arith.addf %149, %160 : vector<16x128xf32>
    %c1_63 = arith.constant 1 : index
    %162 = memref.load %arg4[%c1_63] : memref<4xf32, #tpu.memory_space<smem>>
    %163 = vector.broadcast %162 : f32 to vector<16x16xf32>
    %164 = arith.mulf %148, %163 : vector<16x16xf32>
    %165 = arith.mulf %134, %164 : vector<16x16xf32>
    %c1_64 = arith.constant 1 : index
    %166 = memref.load %arg5[%c1_64] : memref<4xf32, #tpu.memory_space<smem>>
    %167 = vector.broadcast %166 : f32 to vector<16x16xf32>
    %168 = arith.addf %165, %167 : vector<16x16xf32>
    %169 = vector.extract_strided_slice %3 {offsets = [0, 1152], sizes = [16, 128], strides = [1, 1]} : vector<16x1536xf32> to vector<16x128xf32>
    %cst_65 = arith.constant dense<0.000000e+00> : vector<16x128xf32>
    %170 = tpu.matmul %168, %169, %cst_65 {dimension_numbers = #tpu.dot_dimension_numbers<[1], [0], [0], [1], [0, 0, 1, 1], [], []>} : vector<16x16xf32>, vector<16x128xf32>, vector<16x128xf32> -> vector<16x128xf32>
    %c128 = arith.constant 128 : index
    %c0_66 = arith.constant 0 : index
    %171 = vector.load %arg6[%c128, %c0_66] : memref<512x128xf32, #tpu.memory_space<vmem>>, vector<128x128xf32>
    %cst_67 = arith.constant dense<0.000000e+00> : vector<16x128xf32>
    %172 = tpu.matmul %170, %171, %cst_67 {dimension_numbers = #tpu.dot_dimension_numbers<[1], [0], [0], [1], [0, 0, 1, 1], [], []>} : vector<16x128xf32>, vector<128x128xf32>, vector<16x128xf32> -> vector<16x128xf32>
    %173 = arith.addf %161, %172 : vector<16x128xf32>
    %c2_68 = arith.constant 2 : index
    %174 = memref.load %arg4[%c2_68] : memref<4xf32, #tpu.memory_space<smem>>
    %175 = vector.broadcast %174 : f32 to vector<16x16xf32>
    %176 = arith.mulf %148, %175 : vector<16x16xf32>
    %177 = arith.mulf %135, %176 : vector<16x16xf32>
    %c2_69 = arith.constant 2 : index
    %178 = memref.load %arg5[%c2_69] : memref<4xf32, #tpu.memory_space<smem>>
    %179 = vector.broadcast %178 : f32 to vector<16x16xf32>
    %180 = arith.addf %177, %179 : vector<16x16xf32>
    %181 = vector.extract_strided_slice %3 {offsets = [0, 1280], sizes = [16, 128], strides = [1, 1]} : vector<16x1536xf32> to vector<16x128xf32>
    %cst_70 = arith.constant dense<0.000000e+00> : vector<16x128xf32>
    %182 = tpu.matmul %180, %181, %cst_70 {dimension_numbers = #tpu.dot_dimension_numbers<[1], [0], [0], [1], [0, 0, 1, 1], [], []>} : vector<16x16xf32>, vector<16x128xf32>, vector<16x128xf32> -> vector<16x128xf32>
    %c256 = arith.constant 256 : index
    %c0_71 = arith.constant 0 : index
    %183 = vector.load %arg6[%c256, %c0_71] : memref<512x128xf32, #tpu.memory_space<vmem>>, vector<128x128xf32>
    %cst_72 = arith.constant dense<0.000000e+00> : vector<16x128xf32>
    %184 = tpu.matmul %182, %183, %cst_72 {dimension_numbers = #tpu.dot_dimension_numbers<[1], [0], [0], [1], [0, 0, 1, 1], [], []>} : vector<16x128xf32>, vector<128x128xf32>, vector<16x128xf32> -> vector<16x128xf32>
    %185 = arith.addf %173, %184 : vector<16x128xf32>
    %c3_73 = arith.constant 3 : index
    %186 = memref.load %arg4[%c3_73] : memref<4xf32, #tpu.memory_space<smem>>
    %187 = vector.broadcast %186 : f32 to vector<16x16xf32>
    %188 = arith.mulf %148, %187 : vector<16x16xf32>
    %189 = arith.mulf %136, %188 : vector<16x16xf32>
    %c3_74 = arith.constant 3 : index
    %190 = memref.load %arg5[%c3_74] : memref<4xf32, #tpu.memory_space<smem>>
    %191 = vector.broadcast %190 : f32 to vector<16x16xf32>
    %192 = arith.addf %189, %191 : vector<16x16xf32>
    %193 = vector.extract_strided_slice %3 {offsets = [0, 1408], sizes = [16, 128], strides = [1, 1]} : vector<16x1536xf32> to vector<16x128xf32>
    %cst_75 = arith.constant dense<0.000000e+00> : vector<16x128xf32>
    %194 = tpu.matmul %192, %193, %cst_75 {dimension_numbers = #tpu.dot_dimension_numbers<[1], [0], [0], [1], [0, 0, 1, 1], [], []>} : vector<16x16xf32>, vector<16x128xf32>, vector<16x128xf32> -> vector<16x128xf32>
    %c384 = arith.constant 384 : index
    %c0_76 = arith.constant 0 : index
    %195 = vector.load %arg6[%c384, %c0_76] : memref<512x128xf32, #tpu.memory_space<vmem>>, vector<128x128xf32>
    %cst_77 = arith.constant dense<0.000000e+00> : vector<16x128xf32>
    %196 = tpu.matmul %194, %195, %cst_77 {dimension_numbers = #tpu.dot_dimension_numbers<[1], [0], [0], [1], [0, 0, 1, 1], [], []>} : vector<16x128xf32>, vector<128x128xf32>, vector<16x128xf32> -> vector<16x128xf32>
    %197 = arith.addf %185, %196 : vector<16x128xf32>
    %c0_78 = arith.constant 0 : index
    %c0_79 = arith.constant 0 : index
    %198 = vector.load %arg7[%c0_78, %c0_79] : memref<1x128xf32, #tpu.memory_space<vmem>>, vector<1x128xf32>
    %199 = vector.broadcast %198 : vector<1x128xf32> to vector<16x128xf32>
    %200 = arith.addf %197, %199 : vector<16x128xf32>
    %c0_80 = arith.constant 0 : index
    %c0_81 = arith.constant 0 : index
    %c0_82 = arith.constant 0 : index
    %201 = vector.load %arg8[%c0_80, %c0_81, %c0_82] : memref<1x16x128xf32, #tpu.memory_space<vmem>>, vector<1x16x128xf32>
    %202 = vector.shape_cast %201 : vector<1x16x128xf32> to vector<16x128xf32>
    %203 = vector.shape_cast %200 : vector<16x128xf32> to vector<1x16x128xf32>
    tpu.vector_store %arg8[%c0_80, %c0_81, %c0_82], %203 {strides = array<i32>} : memref<1x16x128xf32, #tpu.memory_space<vmem>>, vector<1x16x128xf32>,
    return
  }
  func.func @transform_0(%arg0: i32) -> (i32, i32, i32) {
    %c0_i32 = arith.constant 0 : i32
    %c0_i32_0 = arith.constant 0 : i32
    %c0_i32_1 = arith.constant 0 : i32
    return %arg0, %c0_i32, %c0_i32_0 : i32, i32, i32
  }
  func.func @transform_1(%arg0: i32) -> (i32, i32) {
    %c0_i32 = arith.constant 0 : i32
    %c0_i32_0 = arith.constant 0 : i32
    %c0_i32_1 = arith.constant 0 : i32
    return %c0_i32, %c0_i32_0 : i32, i32
  }
  func.func @transform_2(%arg0: i32) -> (i32, i32) {
    %c0_i32 = arith.constant 0 : i32
    %c0_i32_0 = arith.constant 0 : i32
    %c0_i32_1 = arith.constant 0 : i32
    return %c0_i32, %c0_i32_0 : i32, i32
  }
  func.func @transform_3(%arg0: i32) -> i32 {
    %c0_i32 = arith.constant 0 : i32
    %c0_i32_0 = arith.constant 0 : i32
    return %c0_i32 : i32
  }
  func.func @transform_4(%arg0: i32) -> i32 {
    %c0_i32 = arith.constant 0 : i32
    %c0_i32_0 = arith.constant 0 : i32
    return %c0_i32 : i32
  }
  func.func @transform_5(%arg0: i32) -> (i32, i32) {
    %c0_i32 = arith.constant 0 : i32
    %c0_i32_0 = arith.constant 0 : i32
    %c0_i32_1 = arith.constant 0 : i32
    return %c0_i32, %c0_i32_0 : i32, i32
  }
  func.func @transform_6(%arg0: i32) -> (i32, i32) {
    %c0_i32 = arith.constant 0 : i32
    %c0_i32_0 = arith.constant 0 : i32
    %c0_i32_1 = arith.constant 0 : i32
    return %c0_i32, %c0_i32_0 : i32, i32
  }
  func.func @transform_7(%arg0: i32) -> (i32, i32, i32) {
    %c0_i32 = arith.constant 0 : i32
    %c0_i32_0 = arith.constant 0 : i32
    %c0_i32_1 = arith.constant 0 : i32
    return %arg0, %c0_i32, %c0_i32_0 : i32, i32, i32
  }
}

</mosaic_0001>

<bundles_post_ra>
// kernel: tpu_custom_call.1
= control target key start
LH: loop header
LB: loop body
LE: loop exit
PB: predicated region body
PF: predicated region fallthrough
CT: control target
= control target key end

     0   :  { %s4012_s0 = inlined_call_operand.hbm [shape: f32[2,16,128], index: 0, kind: input, shape index: {}]   ;;  %s4013_s1 = inlined_call_operand.hbm [shape: f32[128,1536], index: 1, kind: input, shape index: {}]   ;;  %s4014_s2 = inlined_call_operand.vmem [shape: f32[4,4], index: 2, kind: input, shape index: {}]   ;;  %s4015_s3 = inlined_call_operand.vmem [shape: f32[4], index: 3, kind: input, shape index: {}]   ;;  %s4016_s4 = inlined_call_operand.vmem [shape: f32[4], index: 4, kind: input, shape index: {}]   ;;  %s4017_s5 = inlined_call_operand.hbm [shape: f32[512,128], index: 5, kind: input, shape index: {}]   ;;  %s4018_s6 = inlined_call_operand.vmem [shape: f32[1,128], index: 6, kind: input, shape index: {}]   ;;  %s4019_s7 = inlined_call_operand.hbm [shape: f32[2,16,128], index: 7, kind: output, shape index: {}]  }
   0x1   :  { %4025 = sst [smem:[#allocation20_spill]] %s4012_s0 }
   0x2   :  { %4026 = sst [smem:[#allocation21_spill]] %s4013_s1 }
   0x3   :  { %4027 = sst [smem:[#allocation22_spill]] %s4014_s2 }
   0x4   :  { %12 = vsyncpa [#allocation3], 0 }
   0x5   :  { %14 = vsyncpa [#allocation3 + $0x1], 0 }
   0x6   :  { %15 = vsyncpa [#allocation7], 0 }
   0x7   :  { %16 = vsyncpa [#allocation5], 0 }
   0x8   :  { %17 = vsyncpa [#allocation10], 0 }
   0x9   :  { %18 = vsyncpa [#allocation4], 0 }
   0xa   :  { %20 = vsyncpa [#allocation4 + $0x1], 0  ;;  %s3553_s24 = smov 0   ;;  %s3555_s25 = smov 0  }
   0xb   :  { %s3557_s26 = smov 0   ;;  %s3559_s27 = smov 0  }
   0xc LB: > { %s3499_s28 = smov [#allocation6]   ;;  %s3574_s30 = sadd.s32 4294967295, %s3497_s27   ;;  %s3497_s27 = sphi %s3559_s27, %s4056_s27   ;;  %s3493_s26 = sphi %s3557_s26, %s4055_s26   ;;  %s3489_s25 = sphi %s3555_s25, %s4054_s25   ;;  %s3485_s24 = sphi %s3553_s24, %s4053_s24  }
   0xd   : > { %s221_s29 = sshll.u32 %s3499_s28, 4  ;;  %p2431_p0 = scmp.ge.s32.totalorder %s3497_s27, 1  ;;  %s3579_s29 = int_to_ptr.vmem [resolvable:$true] %s221_s29 }
   0xe   : > { %p4020_p1 = scmp.eq.s32.totalorder %s3574_s30, 0  ;;  %p209_p2 = scmp.lt.s32.totalorder %s3497_s27, 3 }
   0xf   : > { %s246_s11 = sshll.u32 %s4015_s3, 4  ;;  %s4030_s2 = sld [smem:[#allocation22_spill]]  ;;  %s3591_s11 = int_to_ptr.vmem [resolvable:$true] %s246_s11 }
  0x10   : > { %p3581_p3 = pnand %p2431_p0, %p209_p2  ;;  %s257_s18 = sshll.u32 %s4016_s4, 4  ;;  %s258_s18 = int_to_ptr.vmem [resolvable:$true] %s257_s18 }
  0x11   : > { %s4031_s1 = sld [smem:[#allocation21_spill]] }
  0x12   : > { %s4028_s8 = scalar_select %p3581_p3, 1, 0 }
  0x13   : > { %p3168_p5 = pneg %p3581_p3 }
  0x15   : > { %p3595_p6 = pnand %p3168_p5, %p4020_p1  ;;  %s235_s15 = sshll.u32 %s4030_s2, 4  ;;  %s3602_s15 = int_to_ptr.vmem [resolvable:$true] %s235_s15 }
  0x17   : > { %s3284_s21 = scalar_lea.hbm %s4031_s1, 24576  ;;  %p3615_p8 = pneg %p3595_p6 }
  0x18   : > { %p3285_p7 = scmp.ne.s32.totalorder %s4031_s1, %s3284_s21  ;;  %p3291_p11 = scmp.lt.u32.totalorder %s3284_s21, %s4031_s1 }
  0x1a   : > { %p3287_p9 = pnand %p3615_p8, %p3285_p7 }
  0x1c   : > { %p3288_p10 = pneg %p3287_p9 }
  0x1e   : > { %p3293_p12 = pnand %p3291_p11, %p3288_p10 }
  0x20   : > { %3296 = shalt.err (!%p3293_p12)
}
  0x21   : > { %s3297_s13 = scalar_lea.vmem %s3579_s29, 24576  ;;  %p3305_p5 = scmp.lt.s32.totalorder %s3579_s29, %s3579_s29 }
  0x22   : > { %p3298_p13 = scmp.ne.s32.totalorder %s3579_s29, %s3297_s13  ;;  %p3306_p4 = scmp.lt.s32.totalorder %s3297_s13, %s3297_s13 }
  0x24   : > { %p3300_p0 = pnand %p3298_p13, %p3615_p8  ;;  %p3307_p7 = por %p3306_p4, %p3305_p5 }
  0x26   : > { %p3301_p2 = pneg %p3300_p0 }
  0x28   : > { %p3308_p9 = pnand %p3307_p7, %p3301_p2 }
  0x2a   : > { %3311 = shalt.err (!%p3308_p9)
}
  0x2b   : > { %s3500_s14 = smov 1536   ;;  %s3501_s16 = smov 96  }
  0x2c   : > { %3171 = dma.hbm_to_vmem [thread:$0]  (!%p3595_p6), %s4031_s1, 24576, %s3579_s29, [#allocation7], %s3500_s14, %s3500_s14, %s3501_s16  }
  0x2d   : > { %s3312_s20 = scalar_lea.vmem %s3591_s11, 16  ;;  %p3320_p12 = scmp.lt.s32.totalorder %s3591_s11, %s3591_s11 }
  0x2e   : > { %p3313_p10 = scmp.ne.s32.totalorder %s3591_s11, %s3312_s20  ;;  %p3321_p13 = scmp.lt.s32.totalorder %s3312_s20, %s3312_s20 }
  0x30   : > { %p3315_p11 = pnand %p3313_p10, %p3615_p8  ;;  %p3322_p0 = por %p3321_p13, %p3320_p12 }
  0x32   : > { %p3316_p4 = pneg %p3315_p11 }
  0x34   : > { %p3323_p2 = pnand %p3322_p0, %p3316_p4 }
  0x36   : > { %3326 = shalt.err (!%p3323_p2)
}
  0x37   : > { %s3502_s21 = smov [#allocation9]   ;;  %s3327_s29 = scalar_lea.vmem %s3602_s15, 64 }
  0x38   : > { %3177 = dma.vmem_to_smem (!%p3595_p6), %s3591_s11, 16, %s3502_s21, [#allocation10]  }
  0x39   : > { %p3328_p5 = scmp.ne.s32.totalorder %s3602_s15, %s3327_s29  ;;  %p3335_p10 = scmp.lt.s32.totalorder %s3602_s15, %s3602_s15 }
  0x3a   : > { %p3336_p11 = scmp.lt.s32.totalorder %s3327_s29, %s3327_s29 }
  0x3b   : > { %p3330_p7 = pnand %p3328_p5, %p3615_p8 }
  0x3c   : > { %p3337_p12 = por %p3336_p11, %p3335_p10 }
  0x3d   : > { %p3331_p9 = pneg %p3330_p7 }
  0x3f   : > { %p3338_p4 = pnand %p3337_p12, %p3331_p9 }
  0x41   : > { %3341 = shalt.err (!%p3338_p4)
}
  0x42   : > { %s3503_s22 = smov [#allocation8]   ;;  %s3342_s11 = scalar_lea.vmem %s258_s18, 16 }
  0x43   : > { %3174 = dma.vmem_to_smem (!%p3595_p6), %s3602_s15, 64, %s3503_s22, [#allocation5]  }
  0x44   : > { %p3343_p13 = scmp.ne.s32.totalorder %s258_s18, %s3342_s11  ;;  %p3350_p5 = scmp.lt.s32.totalorder %s258_s18, %s258_s18 }
  0x45   : > { %p3351_p7 = scmp.lt.s32.totalorder %s3342_s11, %s3342_s11 }
  0x46   : > { %p3345_p0 = pnand %p3343_p13, %p3615_p8 }
  0x47   : > { %p3352_p9 = por %p3351_p7, %p3350_p5 }
  0x48   : > { %p3346_p2 = pneg %p3345_p0 }
  0x4a   : > { %p3353_p10 = pnand %p3352_p9, %p3346_p2 }
  0x4c   : > { %3356 = shalt.err (!%p3353_p10)
}
  0x4d   : > { %s3504_s10 = smov [#allocation11]   ;;  %s3505_s15 = smov [#allocation12]  }
  0x4e   : > { %3180 = dma.vmem_to_smem (!%p3595_p6), %s258_s18, 16, %s3504_s10, [#allocation10]  }
  0x4f   : > { %s267_s13 = sshll.u32 %s3505_s15, 4  ;;  %s3357_s17 = scalar_lea.hbm %s4017_s5, 8192  ;;  %s268_s13 = int_to_ptr.vmem [resolvable:$true] %s267_s13 }
  0x50   : > { %p3358_p11 = scmp.ne.s32.totalorder %s4017_s5, %s3357_s17  ;;  %p3364_p13 = scmp.lt.u32.totalorder %s3357_s17, %s4017_s5 }
  0x52   : > { %p3360_p12 = pnand %p3358_p11, %p3615_p8 }
  0x54   : > { %p3361_p4 = pneg %p3360_p12 }
  0x56   : > { %p3366_p0 = pnand %p3364_p13, %p3361_p4 }
  0x58   : > { %3369 = shalt.err (!%p3366_p0)
}
  0x59   : > { %s3370_s18 = scalar_lea.vmem %s268_s13, 8192  ;;  %p3378_p9 = scmp.lt.s32.totalorder %s268_s13, %s268_s13 }
  0x5a   : > { %p3371_p2 = scmp.ne.s32.totalorder %s268_s13, %s3370_s18  ;;  %p3379_p10 = scmp.lt.s32.totalorder %s3370_s18, %s3370_s18 }
  0x5c   : > { %p3373_p5 = pnand %p3371_p2, %p3615_p8  ;;  %p3380_p1 = por %p3379_p10, %p3378_p9 }
  0x5e   : > { %p3374_p7 = pneg %p3373_p5 }
  0x60   : > { %p3381_p3 = pnand %p3380_p1, %p3374_p7 }
  0x62   : > { %3384 = shalt.err (!%p3381_p3)
}
  0x63   : > { %s4022_s22 = smov 128   ;;  %s3507_s28 = smov 8  }
  0x64   : > { %3183 = dma.hbm_to_vmem [thread:$0]  (!%p3595_p6), %s4017_s5, 8192, %s268_s13, [#allocation7], %s4022_s22, %s4022_s22, %s3507_s28  }
  0x65   : > { %s2430_s11 = sadd.s32 4294967294, %s3497_s27   ;;  %s3685_s10 = sadd.s32 1, %s3497_s27  }
  0x66   : > { %s33_s15 = sadd.s32 1, %s3493_s26  ;;  %s30_s14 = ssub.s32 %s3497_s27, %s3685_s10 }
  0x67   : > { %p40_p1 = scmp.ne.s32.totalorder %s3493_s26, %s3489_s25  ;;  %p31_p3 = scmp.eq.s32.totalorder %s30_s14, 0 }
  0x68   : > { %p41_p8 = scmp.eq.s32.totalorder %s3497_s27, 0  ;;  %p46_p11 = scmp.ne.s32.totalorder %s3489_s25, %s3485_s24 }
  0x69   : > { %p196_p12 = scmp.eq.s32.totalorder %s3574_s30, 1  ;;  %p4033_p13 = scmp.eq.s32.totalorder %s3574_s30, 0 }
  0x6a   : > { %s3697_s12 = scalar_select %p31_p3, %s3493_s26, %s33_s15  }
  0x6b   : > { %p42_p4 = por %p41_p8, %p40_p1  ;;  %p3701_p0 = por %p4033_p13, %p46_p11 }
  0x6c   : > { %p3705_p6 = por %p196_p12, %p40_p1  ;;  %p202_p2 = scmp.eq.s32.totalorder %s2430_s11, 1 }
  0x6d   : > { %p3197_p5 = scmp.lt.s32.totalorder %s3497_s27, 2  ;;  %s284_s17 = sand.u32 1, %s3493_s26  }
  0x6e   : > { %s4035_s13 = scalar_select %p3705_p6, 1, 0 }
  0x6f   : > { %p3711_p7 = por %p202_p2, %p46_p11  ;;  %s2438_s20 = sshll.u32 %s284_s17, 4 }
  0x70   : > { %s2484_s21 = sshll.u32 %s3497_s27, 8  ;;  %s4037_s0 = sld [smem:[#allocation20_spill]] }
  0x71   : > { %s4036_s19 = scalar_select %p3711_p7, 1, 0 }
  0x72   : > { %s288_s9 = scalar_lea.vmem [#allocation2], %s2438_s20  ;;  %p3721_p9 = pnand %p3197_p5, %p42_p4 }
  0x73   : > { %s295_s15 = sshll.u32 %s288_s9, 4  ;;  %s3727_s14 = scalar_lea.sflag [#allocation3], %s284_s17  ;;  %s3725_s15 = int_to_ptr.vmem [resolvable:$true] %s295_s15 }
  0x74   : > { %p3387_p1 = pneg %p3721_p9 }
  0x76   : > { %s3719_s23 = scalar_lea.hbm %s4037_s0, %s2484_s21  ;;  %s3390_s29 = scalar_lea.hbm %s4037_s0, 512 }
  0x77   : > { %s3385_s22 = scalar_lea.hbm %s3719_s23, 256  ;;  %p3391_p11 = scmp.lt.u32.totalorder %s3719_s23, %s4037_s0 }
  0x78   : > { %p3386_p10 = scmp.ne.s32.totalorder %s3719_s23, %s3385_s22  ;;  %p3392_p12 = scmp.lt.u32.totalorder %s3390_s29, %s3385_s22 }
  0x79   : > { %p3394_p13 = scmp.lt.u32.totalorder %s3385_s22, %s3719_s23 }
  0x7a   : > { %p3388_p3 = pnand %p3387_p1, %p3386_p10  ;;  %p3393_p4 = por %p3392_p12, %p3391_p11 }
  0x7c   : > { %p3389_p8 = pneg %p3388_p3  ;;  %p3395_p2 = por %p3394_p13, %p3393_p4 }
  0x7e   : > { %p3396_p5 = pnand %p3395_p2, %p3389_p8 }
  0x80   : > { %3399 = shalt.err (!%p3396_p5)
}
  0x81   : > { %s3400_s17 = scalar_lea.vmem %s3725_s15, 256  ;;  %s3508_s20 = smov [#allocation2]  }
  0x82   : > { %p3401_p10 = scmp.ne.s32.totalorder %s3725_s15, %s3400_s17  ;;  %s3405_s21 = sshll.u32 %s3508_s20, 4  ;;  %s3406_s21 = int_to_ptr.vmem [resolvable:$false] %s3405_s21 }
  0x83   : > { %s3407_s18 = scalar_lea.vmem %s3406_s21, 512  ;;  %p3408_p6 = scmp.lt.s32.totalorder %s3725_s15, %s3406_s21 }
  0x84   : > { %p3403_p3 = pnand %p3401_p10, %p3387_p1  ;;  %p3409_p11 = scmp.lt.s32.totalorder %s3407_s18, %s3400_s17 }
  0x86   : > { %p3404_p7 = pneg %p3403_p3  ;;  %p3410_p12 = por %p3409_p11, %p3408_p6 }
  0x88   : > { %p3411_p4 = pnand %p3410_p12, %p3404_p7 }
  0x8a   : > { %3414 = shalt.err (!%p3411_p4)
}
  0x8b   : > { %s4039_s22 = smov 128   ;;  %p4040_p1 = scmp.ne.s32.totalorder %s4028_s8, 0 }
  0x8c   : > { %3187 = dma.hbm_to_vmem [thread:$0]  (!%p3721_p9), %s3719_s23, 256, %s3725_s15, %s3727_s14, %s4039_s22, %s4039_s22, %s3507_s28  }
  0x8d   : > { %307 = sbr.rel (%p4040_p1) target bundleno = 1644 (0x66c), region = 48  ;;  %s3761_s29 = sand.u32 (!%p4040_p1), 1, %s3489_s25  }
  0x8e   : > { %s4024_s9 = sshll.u32 (!%p4040_p1), %s3761_s29, 4  ;;  %s310_s17 = scalar_lea.sflag (!%p4040_p1), [#allocation3], %s3761_s29 }
  0x8f   : > { %s3767_s11 = scalar_lea.vmem (!%p4040_p1), [#allocation2], %s4024_s9 }
  0x94   : > { %3460 = dma.done.wait (%p3701_p0), %s310_s17, 256  }
  0x95   : > { %3462 = vsyncadd (%p3701_p0), %s310_s17, 4294967040  ;;  %p4041_p6 = scmp.eq.s32.totalorder %s3574_s30, 0 }
  0x97   : > { %3464 = dma.done.wait (%p4041_p6), [#allocation7], 24576   ;;  %p4042_p7 = pmov %p4041_p6 }
  0x98   : > { %p4043_p9 = pmov %p4041_p6 }
  0x99   : > { %3466 = vsyncadd (%p4042_p7), [#allocation7], 4294942720 }
  0x9a   : > { %3468 = dma.done.wait (%p4043_p9), [#allocation5], 64   ;;  %p4044_p8 = pmov %p4041_p6 }
  0x9b   : > { %p4045_p13 = pmov %p4041_p6 }
  0x9c   : > { %3470 = vsyncadd (%p4044_p8), [#allocation5], 4294967232 }
  0x9d   : > { %3472 = dma.done.wait (%p4045_p13), [#allocation10], 32   ;;  %p4046_p2 = pmov %p4041_p6 }
  0x9f   : > { %3474 = vsyncadd (%p4046_p2), [#allocation10], 4294967264  ;;  %p4047_p0 = pmov %p4046_p2 }
  0xa1   : > { %3476 = dma.done.wait (%p4047_p0), [#allocation7], 8192   ;;  %p4048_p5 = pmov %p4047_p0 }
  0xa3   : > { %3478 = vsyncadd (%p4048_p5), [#allocation7], 4294959104 }
  0xa4   : > { %338 = sfence }
  0xa5   : > { %v368_v0 = vld [vmem:[#allocation6 + $0x8] sm:$0xff]  ;;  %v367_v2 = vld [vmem:[#allocation6] sm:$0xff]  ;;  %v3509_v7 = vmov 0.0   ;;  %v370_v48 = vld [vmem:[#allocation6 + $0x18] sm:$0xff]  ;;  %vm1098_vm0 = vcmask 130048   ;;  %s3865_s8 = sld [smem:[#allocation8]] }
  0xa6   : > { %v380_v1 = vld [vmem:[#allocation6 + $0x68] sm:$0xff]  ;;  %v379_v4 = vld [vmem:[#allocation6 + $0x60] sm:$0xff]  ;;  %623 = vmatprep.mubr.f32.mxu1 %v3509_v7  ;;  %931 = vmatprep.mubr.f32.mxu0 %v3509_v7  ;;  %v382_v49 = vld [vmem:[#allocation6 + $0x78] sm:$0xff]  ;;  %s3867_s28 = sld [smem:[#allocation8 + $0x1]]  ;;  %s3869_s16 = sld [smem:[#allocation8 + $0x2]] }
  0xa7   : > { %v2786_v3 = vpack.c.bf16 %v380_v1, %v368_v0  ;;  %v392_v5 = vld [vmem:[#allocation6 + $0xc8] sm:$0xff]  ;;  %v2788_v8 = vpack.c.bf16 %v379_v4, %v367_v2  ;;  %v391_v10 = vld [vmem:[#allocation6 + $0xc0] sm:$0xff]  ;;  %v2818_v51 = vpack.c.bf16 %v382_v49, %v370_v48  ;;  %v369_v52 = vld [vmem:[#allocation6 + $0x10] sm:$0xff]  ;;  %s3871_s23 = sld [smem:[#allocation8 + $0x3]]  ;;  %s3873_s15 = sld [smem:[#allocation8 + $0x80]] }
  0xa8   : > { %v404_v6 = vld [vmem:[#allocation6 + $0x128] sm:$0xff]  ;;  %v403_v11 = vld [vmem:[#allocation6 + $0x120] sm:$0xff]  ;;  %v381_v53 = vld [vmem:[#allocation6 + $0x70] sm:$0xff]  ;;  %s3875_s14 = sld [smem:[#allocation8 + $0x81]]  ;;  %s3877_s20 = sld [smem:[#allocation8 + $0x82]] }
  0xa9   : > { %v2790_v9 = vpack.c.bf16 %v404_v6, %v392_v5  ;;  %v416_v12 = vld [vmem:[#allocation6 + $0x188] sm:$0xff]  ;;  %2787 = vmatprep.subr.bf16.mxu1 %v2786_v3  ;;  %v2792_v14 = vpack.c.bf16 %v403_v11, %v391_v10  ;;  %v415_v16 = vld [vmem:[#allocation6 + $0x180] sm:$0xff]  ;;  %v394_v54 = vld [vmem:[#allocation6 + $0xd8] sm:$0xff]  ;;  %v2820_v57 = vpack.c.bf16 %v381_v53, %v369_v52  ;;  %s3879_s21 = sld [smem:[#allocation8 + $0x83]]  ;;  %s3881_s18 = sld [smem:[#allocation8 + $0x100]] }
  0xaa   : > { %v428_v13 = vld [vmem:[#allocation6 + $0x1e8] sm:$0xff]  ;;  %2789 = vmatpush1.bf16.msra.mxu1 %v2788_v8  ;;  %v427_v17 = vld [vmem:[#allocation6 + $0x1e0] sm:$0xff]  ;;  %v406_v55 = vld [vmem:[#allocation6 + $0x138] sm:$0xff]  ;;  %s3883_s22 = sld [smem:[#allocation8 + $0x101]]  ;;  %s3885_s17 = sld [smem:[#allocation8 + $0x102]] }
  0xab   : > { %2791 = vmatprep.subr.bf16.mxu1 %v2790_v9  ;;  %v2794_v15 = vpack.c.bf16 %v428_v13, %v416_v12  ;;  %v440_v18 = vld [vmem:[#allocation6 + $0x248] sm:$0xff]  ;;  %v2796_v20 = vpack.c.bf16 %v427_v17, %v415_v16  ;;  %v439_v22 = vld [vmem:[#allocation6 + $0x240] sm:$0xff]  ;;  %v2822_v58 = vpack.c.bf16 %v406_v55, %v394_v54  ;;  %v393_v59 = vld [vmem:[#allocation6 + $0xd0] sm:$0xff]  ;;  %s3889_s9 = sld [smem:[#allocation8 + $0x180]]  ;;  %s3891_s0 = sld [smem:[#allocation8 + $0x181]] }
  0xac   : > { %v452_v19 = vld [vmem:[#allocation6 + $0x2a8] sm:$0xff]  ;;  %v451_v23 = vld [vmem:[#allocation6 + $0x2a0] sm:$0xff]  ;;  %v405_v60 = vld [vmem:[#allocation6 + $0x130] sm:$0xff]  ;;  %s3893_s1 = sld [smem:[#allocation8 + $0x182]]  ;;  %s3895_s2 = sld [smem:[#allocation8 + $0x183]] }
  0xad   : > { %v2798_v21 = vpack.c.bf16 %v452_v19, %v440_v18  ;;  %v464_v24 = vld [vmem:[#allocation6 + $0x308] sm:$0xff]  ;;  %v2800_v26 = vpack.c.bf16 %v451_v23, %v439_v22  ;;  %v463_v28 = vld [vmem:[#allocation6 + $0x300] sm:$0xff]  ;;  %v418_v61 = vld [vmem:[#allocation6 + $0x198] sm:$0xff]  ;;  %v2824_v63 = vpack.c.bf16 %v405_v60, %v393_v59  ;;  %p4050_p3 = scmp.ne.s32.totalorder %s4035_s13, 0 }
  0xae   : > { %2793 = vmatpush1.bf16.msra.mxu1 %v2792_v14  ;;  %v476_v25 = vld [vmem:[#allocation6 + $0x368] sm:$0xff]  ;;  %v475_v29 = vld [vmem:[#allocation6 + $0x360] sm:$0xff]  ;;  %v430_v62 = vld [vmem:[#allocation6 + $0x1f8] sm:$0xff] }
  0xaf   : > { %2795 = vmatprep.subr.bf16.mxu1 %v2794_v15  ;;  %v2802_v27 = vpack.c.bf16 %v476_v25, %v464_v24  ;;  %v488_v30 = vld [vmem:[#allocation6 + $0x3c8] sm:$0xff]  ;;  %v2804_v32 = vpack.c.bf16 %v475_v29, %v463_v28  ;;  %v487_v34 = vld [vmem:[#allocation6 + $0x3c0] sm:$0xff]  ;;  %v2826_v1 = vpack.c.bf16 %v430_v62, %v418_v61  ;;  %v417_v2 = vld [vmem:[#allocation6 + $0x190] sm:$0xff] }
  0xb0   : > { %v500_v31 = vld [vmem:[#allocation6 + $0x428] sm:$0xff]  ;;  %v499_v35 = vld [vmem:[#allocation6 + $0x420] sm:$0xff]  ;;  %v429_v3 = vld [vmem:[#allocation6 + $0x1f0] sm:$0xff] }
  0xb1   : > { %v2806_v33 = vpack.c.bf16 %v500_v31, %v488_v30  ;;  %v512_v36 = vld [vmem:[#allocation6 + $0x488] sm:$0xff]  ;;  %v2808_v38 = vpack.c.bf16 %v499_v35, %v487_v34  ;;  %v511_v40 = vld [vmem:[#allocation6 + $0x480] sm:$0xff]  ;;  %v442_v4 = vld [vmem:[#allocation6 + $0x258] sm:$0xff]  ;;  %v2828_v6 = vpack.c.bf16 %v429_v3, %v417_v2 }
  0xb2   : > { %2797 = vmatpush1.bf16.msra.mxu1 %v2796_v20  ;;  %v524_v37 = vld [vmem:[#allocation6 + $0x4e8] sm:$0xff]  ;;  %v523_v41 = vld [vmem:[#allocation6 + $0x4e0] sm:$0xff]  ;;  %v454_v5 = vld [vmem:[#allocation6 + $0x2b8] sm:$0xff] }
  0xb3   : > { %2799 = vmatprep.subr.bf16.mxu1 %v2798_v21  ;;  %v2810_v39 = vpack.c.bf16 %v524_v37, %v512_v36  ;;  %v536_v42 = vld [vmem:[#allocation6 + $0x548] sm:$0xff]  ;;  %v2812_v44 = vpack.c.bf16 %v523_v41, %v511_v40  ;;  %v535_v46 = vld [vmem:[#allocation6 + $0x540] sm:$0xff]  ;;  %v2830_v8 = vpack.c.bf16 %v454_v5, %v442_v4  ;;  %v441_v9 = vld [vmem:[#allocation6 + $0x250] sm:$0xff] }
  0xb4   : > { %v548_v43 = vld [vmem:[#allocation6 + $0x5a8] sm:$0xff]  ;;  %v547_v47 = vld [vmem:[#allocation6 + $0x5a0] sm:$0xff]  ;;  %v453_v10 = vld [vmem:[#allocation6 + $0x2b0] sm:$0xff] }
  0xb5   : > { %v2814_v45 = vpack.c.bf16 %v548_v43, %v536_v42  ;;  %v2816_v50 = vpack.c.bf16 %v547_v47, %v535_v46  ;;  %v3792_v56 = vld [vmem:[%s3767_s11] sm:$0xff]  ;;  %v3797_v0 = vld [vmem:[%s3767_s11 + $0x8] sm:$0xff]  ;;  %v2832_v15 = vpack.c.bf16 %v453_v10, %v441_v9  ;;  %s3887_s11 = sld [smem:[#allocation8 + $0x103]] }
  0xb6   : > { %2801 = vmatpush1.bf16.msra.mxu1 %v2800_v26  ;;  %v466_v11 = vld [vmem:[#allocation6 + $0x318] sm:$0xff]  ;;  %v376_v13 = vld [vmem:[#allocation6 + $0x48] sm:$0xff]  ;;  %v465_v16 = vld [vmem:[#allocation6 + $0x310] sm:$0xff] }
  0xb7   : > { %2803 = vmatprep.subr.bf16.mxu1 %v2802_v27  ;;  %v478_v12 = vld [vmem:[#allocation6 + $0x378] sm:$0xff]  ;;  %v388_v14 = vld [vmem:[#allocation6 + $0xa8] sm:$0xff]  ;;  %v375_v18 = vld [vmem:[#allocation6 + $0x40] sm:$0xff] }
  0xb8   : > { %v2914_v17 = vpack.c.bf16 %v388_v14, %v376_v13  ;;  %v2834_v19 = vpack.c.bf16 %v478_v12, %v466_v11  ;;  %v477_v20 = vld [vmem:[#allocation6 + $0x370] sm:$0xff]  ;;  %v490_v21 = vld [vmem:[#allocation6 + $0x3d8] sm:$0xff]  ;;  %v387_v22 = vld [vmem:[#allocation6 + $0xa0] sm:$0xff] }
  0xb9   : > { %v502_v23 = vld [vmem:[#allocation6 + $0x438] sm:$0xff]  ;;  %v2916_v24 = vpack.c.bf16 %v387_v22, %v375_v18  ;;  %v400_v25 = vld [vmem:[#allocation6 + $0x108] sm:$0xff]  ;;  %v399_v28 = vld [vmem:[#allocation6 + $0x100] sm:$0xff]  ;;  %v2836_v30 = vpack.c.bf16 %v477_v20, %v465_v16 }
  0xba   : > { %2805 = vmatpush1.bf16.msra.mxu1 %v2804_v32  ;;  %2915 = vmatprep.subr.bf16.mxu0 %v2914_v17  ;;  %v412_v26 = vld [vmem:[#allocation6 + $0x168] sm:$0xff]  ;;  %v411_v29 = vld [vmem:[#allocation6 + $0x160] sm:$0xff]  ;;  %v489_v31 = vld [vmem:[#allocation6 + $0x3d0] sm:$0xff]  ;;  %v2838_v34 = vpack.c.bf16 %v502_v23, %v490_v21 }
  0xbb   : > { %2807 = vmatprep.subr.bf16.mxu1 %v2806_v33  ;;  %v2918_v27 = vpack.c.bf16 %v412_v26, %v400_v25  ;;  %2917 = vmatpush1.bf16.msra.mxu0 %v2916_v24  ;;  %v2920_v32 = vpack.c.bf16 %v411_v29, %v399_v28  ;;  %v424_v33 = vld [vmem:[#allocation6 + $0x1c8] sm:$0xff]  ;;  %v501_v35 = vld [vmem:[#allocation6 + $0x430] sm:$0xff]  ;;  %v514_v36 = vld [vmem:[#allocation6 + $0x498] sm:$0xff] }
  0xbc   : > { %v436_v37 = vld [vmem:[#allocation6 + $0x228] sm:$0xff]  ;;  %v423_v40 = vld [vmem:[#allocation6 + $0x1c0] sm:$0xff]  ;;  %v525_v46 = vld [vmem:[#allocation6 + $0x4f0] sm:$0xff] }
  0xbd   : > { %2919 = vmatprep.subr.bf16.mxu0 %v2918_v27  ;;  %v435_v41 = vld [vmem:[#allocation6 + $0x220] sm:$0xff]  ;;  %v448_v42 = vld [vmem:[#allocation6 + $0x288] sm:$0xff]  ;;  %v538_v49 = vld [vmem:[#allocation6 + $0x558] sm:$0xff] }
  0xbe   : > { %2809 = vmatpush1.bf16.msra.mxu1 %v2808_v38  ;;  %v526_v38 = vld [vmem:[#allocation6 + $0x4f8] sm:$0xff]  ;;  %v460_v43 = vld [vmem:[#allocation6 + $0x2e8] sm:$0xff]  ;;  %v2924_v47 = vpack.c.bf16 %v435_v41, %v423_v40  ;;  %v459_v52 = vld [vmem:[#allocation6 + $0x2e0] sm:$0xff] }
  0xbf   : > { %2811 = vmatprep.subr.bf16.mxu1 %v2810_v39  ;;  %v2922_v39 = vpack.c.bf16 %v436_v37, %v424_v33  ;;  %2921 = vmatpush1.bf16.msra.mxu0 %v2920_v32  ;;  %v2842_v48 = vpack.c.bf16 %v526_v38, %v514_v36  ;;  %v550_v53 = vld [vmem:[#allocation6 + $0x5b8] sm:$0xff]  ;;  %v472_v54 = vld [vmem:[#allocation6 + $0x348] sm:$0xff]  ;;  %v549_v59 = vld [vmem:[#allocation6 + $0x5b0] sm:$0xff] }
  0xc0   : > { %v484_v55 = vld [vmem:[#allocation6 + $0x3a8] sm:$0xff]  ;;  %v2846_v61 = vpack.c.bf16 %v550_v53, %v538_v49  ;;  %v483_v2 = vld [vmem:[#allocation6 + $0x3a0] sm:$0xff] }
  0xc1   : > { %2923 = vmatprep.subr.bf16.mxu0 %v2922_v39  ;;  %v372_v62 = vld [vmem:[#allocation6 + $0x28] sm:$0xff]  ;;  %v371_v10 = vld [vmem:[#allocation6 + $0x20] sm:$0xff] }
  0xc2   : > { %2813 = vmatpush1.bf16.msra.mxu1 %v2812_v44  ;;  %v2840_v44 = vpack.c.bf16 %v501_v35, %v489_v31  ;;  %v384_v3 = vld [vmem:[#allocation6 + $0x88] sm:$0xff]  ;;  %v383_v11 = vld [vmem:[#allocation6 + $0x80] sm:$0xff] }
  0xc3   : > { %2815 = vmatprep.subr.bf16.mxu1 %v2814_v45  ;;  %v513_v45 = vld [vmem:[#allocation6 + $0x490] sm:$0xff]  ;;  %2925 = vmatpush1.bf16.msra.mxu0 %v2924_v47  ;;  %v496_v4 = vld [vmem:[#allocation6 + $0x408] sm:$0xff]  ;;  %v2850_v9 = vpack.c.bf16 %v384_v3, %v372_v62  ;;  %v507_v16 = vld [vmem:[#allocation6 + $0x460] sm:$0xff] }
  0xc4   : > { %v508_v5 = vld [vmem:[#allocation6 + $0x468] sm:$0xff]  ;;  %v395_v21 = vld [vmem:[#allocation6 + $0xe0] sm:$0xff] }
  0xc5   : > { %v396_v12 = vld [vmem:[#allocation6 + $0xe8] sm:$0xff]  ;;  %v2934_v13 = vpack.c.bf16 %v508_v5, %v496_v4  ;;  %v407_v22 = vld [vmem:[#allocation6 + $0x140] sm:$0xff] }
  0xc6   : > { %2817 = vmatpush1.bf16.msra.mxu1 %v2816_v50  ;;  %v2926_v50 = vpack.c.bf16 %v460_v43, %v448_v42  ;;  %v408_v14 = vld [vmem:[#allocation6 + $0x148] sm:$0xff]  ;;  %v519_v27 = vld [vmem:[#allocation6 + $0x4c0] sm:$0xff]  ;;  %v2856_v31 = vpack.c.bf16 %v407_v22, %v395_v21  ;;  %v422_v21 = vld [vmem:[#allocation6 + $0x1b8] sm:$0xff] }
  0xc7   : > { %2819 = vmatprep.subr.bf16.mxu1 %v2818_v51  ;;  %v447_v51 = vld [vmem:[#allocation6 + $0x280] sm:$0xff]  ;;  %v520_v17 = vld [vmem:[#allocation6 + $0x4c8] sm:$0xff]  ;;  %v2854_v20 = vpack.c.bf16 %v408_v14, %v396_v12  ;;  %v385_v14 = vld [vmem:[#allocation6 + $0x90] sm:$0xff] }
  0xc8   : > { %v2928_v60 = vpack.c.bf16 %v459_v52, %v447_v51  ;;  %2927 = vmatprep.subr.bf16.mxu0 %v2926_v50  ;;  %v532_v18 = vld [vmem:[#allocation6 + $0x528] sm:$0xff]  ;;  %v531_v28 = vld [vmem:[#allocation6 + $0x520] sm:$0xff]  ;;  %v434_v22 = vld [vmem:[#allocation6 + $0x218] sm:$0xff] }
  0xc9   : > { %624 = vmatmul.mubr.f32.vlgmr.msra.gmra.mrb[0].mxu1 %v3792_v56  ;;  %v420_v23 = vld [vmem:[#allocation6 + $0x1a8] sm:$0xff]  ;;  %v2938_v26 = vpack.c.bf16 %v532_v18, %v520_v17  ;;  %v419_v33 = vld [vmem:[#allocation6 + $0x1a0] sm:$0xff]  ;;  %v2940_v36 = vpack.c.bf16 %v531_v28, %v519_v27  ;;  %v446_v27 = vld [vmem:[#allocation6 + $0x278] sm:$0xff] }
  0xca   : > { %2821 = vmatpush1.bf16.msra.mxu1 %v2820_v57  ;;  %629 = vmatprep.mubr.f32.mxu1 %v3509_v7  ;;  %v2844_v57 = vpack.c.bf16 %v525_v46, %v513_v45  ;;  %v432_v25 = vld [vmem:[#allocation6 + $0x208] sm:$0xff]  ;;  %v543_v39 = vld [vmem:[#allocation6 + $0x580] sm:$0xff]  ;;  %v458_v28 = vld [vmem:[#allocation6 + $0x2d8] sm:$0xff] }
  0xcb   : > { %2823 = vmatprep.subr.bf16.mxu1 %v2822_v58  ;;  %v537_v58 = vld [vmem:[#allocation6 + $0x550] sm:$0xff]  ;;  %2929 = vmatpush1.bf16.msra.mxu0 %v2928_v60  ;;  %v544_v29 = vld [vmem:[#allocation6 + $0x588] sm:$0xff]  ;;  %v2858_v32 = vpack.c.bf16 %v432_v25, %v420_v23  ;;  %v555_v40 = vld [vmem:[#allocation6 + $0x5e0] sm:$0xff] }
  0xcc   : > { %v444_v35 = vld [vmem:[#allocation6 + $0x268] sm:$0xff]  ;;  %v443_v43 = vld [vmem:[#allocation6 + $0x260] sm:$0xff]  ;;  %v2944_v45 = vpack.c.bf16 %v555_v40, %v543_v39  ;;  %v421_v25 = vld [vmem:[#allocation6 + $0x1b0] sm:$0xff] }
  0xcd   : > { %630 = vmatmul.mubr.f32.gmra.mrb[2].mxu1 %v3797_v0  ;;  %v456_v37 = vld [vmem:[#allocation6 + $0x2c8] sm:$0xff]  ;;  %v467_v50 = vld [vmem:[#allocation6 + $0x320] sm:$0xff]  ;;  %v494_v39 = vld [vmem:[#allocation6 + $0x3f8] sm:$0xff] }
  0xce   : > { %2825 = vmatpush1.bf16.msra.mxu1 %v2824_v63  ;;  %700 = vmatprep.mubr.f32.mxu1 %v3509_v7  ;;  %v2930_v63 = vpack.c.bf16 %v484_v55, %v472_v54  ;;  %v2862_v42 = vpack.c.bf16 %v456_v37, %v444_v35  ;;  %v468_v46 = vld [vmem:[#allocation6 + $0x328] sm:$0xff]  ;;  %v479_v51 = vld [vmem:[#allocation6 + $0x380] sm:$0xff]  ;;  %v469_v37 = vld [vmem:[#allocation6 + $0x330] sm:$0xff] }
  0xcf   : > { %2827 = vmatprep.subr.bf16.mxu1 %v2826_v1  ;;  %v471_v1 = vld [vmem:[#allocation6 + $0x340] sm:$0xff]  ;;  %v480_v47 = vld [vmem:[#allocation6 + $0x388] sm:$0xff]  ;;  %v2868_v54 = vpack.c.bf16 %v479_v51, %v467_v50  ;;  %v506_v40 = vld [vmem:[#allocation6 + $0x458] sm:$0xff] }
  0xd0   : > { %2931 = vmatprep.subr.bf16.mxu0 %v2930_v63  ;;  %v2866_v49 = vpack.c.bf16 %v480_v47, %v468_v46  ;;  %v492_v52 = vld [vmem:[#allocation6 + $0x3e8] sm:$0xff]  ;;  %v515_v63 = vld [vmem:[#allocation6 + $0x4a0] sm:$0xff]  ;;  %v530_v46 = vld [vmem:[#allocation6 + $0x518] sm:$0xff] }
  0xd1   : > { %v504_v53 = vld [vmem:[#allocation6 + $0x448] sm:$0xff]  ;;  %v529_v50 = vld [vmem:[#allocation6 + $0x510] sm:$0xff]  ;;  %v542_v51 = vld [vmem:[#allocation6 + $0x578] sm:$0xff] }
  0xd2   : > { %2829 = vmatpush1.bf16.msra.mxu1 %v2828_v6  ;;  %v2848_v6 = vpack.c.bf16 %v549_v59, %v537_v58  ;;  %v2870_v55 = vpack.c.bf16 %v504_v53, %v492_v52  ;;  %v503_v58 = vld [vmem:[#allocation6 + $0x440] sm:$0xff]  ;;  %v516_v59 = vld [vmem:[#allocation6 + $0x4a8] sm:$0xff]  ;;  %v554_v52 = vld [vmem:[#allocation6 + $0x5d8] sm:$0xff] }
  0xd3   : > { %2831 = vmatprep.subr.bf16.mxu1 %v2830_v8  ;;  %v2932_v8 = vpack.c.bf16 %v483_v2, %v471_v1  ;;  %v528_v60 = vld [vmem:[#allocation6 + $0x508] sm:$0xff]  ;;  %v527_v1 = vld [vmem:[#allocation6 + $0x500] sm:$0xff] }
  0xd4   : > { %v2874_v62 = vpack.c.bf16 %v528_v60, %v516_v59  ;;  %v540_v2 = vld [vmem:[#allocation6 + $0x568] sm:$0xff]  ;;  %v2876_v4 = vpack.c.bf16 %v527_v1, %v515_v63  ;;  %v390_v59 = vld [vmem:[#allocation6 + $0xb8] sm:$0xff]  ;;  %v389_v63 = vld [vmem:[#allocation6 + $0xb0] sm:$0xff] }
  0xd5   : > { %2933 = vmatpush1.bf16.msra.mxu0 %v2932_v8  ;;  %v552_v3 = vld [vmem:[#allocation6 + $0x5c8] sm:$0xff]  ;;  %v551_v8 = vld [vmem:[#allocation6 + $0x5c0] sm:$0xff]  ;;  %v402_v1 = vld [vmem:[#allocation6 + $0x118] sm:$0xff] }
  0xd6   : > { %2833 = vmatpush1.bf16.msra.mxu1 %v2832_v15  ;;  %v495_v15 = vld [vmem:[#allocation6 + $0x400] sm:$0xff]  ;;  %2935 = vmatprep.subr.bf16.mxu0 %v2934_v13  ;;  %v2878_v5 = vpack.c.bf16 %v552_v3, %v540_v2  ;;  %v373_v13 = vld [vmem:[#allocation6 + $0x30] sm:$0xff]  ;;  %v414_v2 = vld [vmem:[#allocation6 + $0x178] sm:$0xff] }
  0xd7   : > { %2835 = vmatprep.subr.bf16.mxu1 %v2834_v19  ;;  %v2852_v19 = vpack.c.bf16 %v383_v11, %v371_v10  ;;  %v2936_v24 = vpack.c.bf16 %v507_v16, %v495_v15  ;;  %v386_v10 = vld [vmem:[#allocation6 + $0x98] sm:$0xff]  ;;  %v2884_v17 = vpack.c.bf16 %v385_v14, %v373_v13  ;;  %v437_v13 = vld [vmem:[#allocation6 + $0x230] sm:$0xff] }
  0xd8   : > { %v398_v15 = vld [vmem:[#allocation6 + $0xf8] sm:$0xff] }
  0xd9   : > { %2937 = vmatpush1.bf16.msra.mxu0 %v2936_v24  ;;  %v410_v16 = vld [vmem:[#allocation6 + $0x158] sm:$0xff]  ;;  %v2890_v24 = vpack.c.bf16 %v434_v22, %v422_v21 }
  0xda   : > { %2837 = vmatpush1.bf16.msra.mxu1 %v2836_v30  ;;  %v556_v30 = vld [vmem:[#allocation6 + $0x5e8] sm:$0xff]  ;;  %2939 = vmatprep.subr.bf16.mxu0 %v2938_v26  ;;  %v2886_v18 = vpack.c.bf16 %v410_v16, %v398_v15  ;;  %v433_v26 = vld [vmem:[#allocation6 + $0x210] sm:$0xff]  ;;  %v450_v14 = vld [vmem:[#allocation6 + $0x298] sm:$0xff] }
  0xdb   : > { %2839 = vmatprep.subr.bf16.mxu1 %v2838_v34  ;;  %v431_v34 = vld [vmem:[#allocation6 + $0x200] sm:$0xff]  ;;  %v2942_v38 = vpack.c.bf16 %v556_v30, %v544_v29  ;;  %v2892_v29 = vpack.c.bf16 %v433_v26, %v421_v25  ;;  %v2894_v30 = vpack.c.bf16 %v458_v28, %v446_v27  ;;  %v462_v15 = vld [vmem:[#allocation6 + $0x2f8] sm:$0xff]  ;;  %v485_v25 = vld [vmem:[#allocation6 + $0x3b0] sm:$0xff] }
  0xdc   : > { %v2860_v41 = vpack.c.bf16 %v431_v34, %v419_v33  ;;  %v470_v33 = vld [vmem:[#allocation6 + $0x338] sm:$0xff] }
  0xdd   : > { %2941 = vmatpush1.bf16.msra.mxu0 %v2940_v36  ;;  %v482_v34 = vld [vmem:[#allocation6 + $0x398] sm:$0xff] }
  0xde   : > { %2841 = vmatpush1.bf16.msra.mxu1 %v2840_v44  ;;  %v455_v44 = vld [vmem:[#allocation6 + $0x2c0] sm:$0xff]  ;;  %2943 = vmatprep.subr.bf16.mxu0 %v2942_v38  ;;  %v2898_v36 = vpack.c.bf16 %v482_v34, %v470_v33  ;;  %v481_v38 = vld [vmem:[#allocation6 + $0x390] sm:$0xff]  ;;  %v486_v21 = vld [vmem:[#allocation6 + $0x3b8] sm:$0xff] }
  0xdf   : > { %2843 = vmatprep.subr.bf16.mxu1 %v2842_v48  ;;  %v2864_v48 = vpack.c.bf16 %v455_v44, %v443_v43  ;;  %v493_v43 = vld [vmem:[#allocation6 + $0x3f0] sm:$0xff]  ;;  %v498_v26 = vld [vmem:[#allocation6 + $0x418] sm:$0xff] }
  0xe0   : > { %v505_v44 = vld [vmem:[#allocation6 + $0x450] sm:$0xff]  ;;  %v510_v27 = vld [vmem:[#allocation6 + $0x478] sm:$0xff] }
  0xe1   : > { %2945 = vmatpush1.bf16.msra.mxu0 %v2944_v45  ;;  %v518_v45 = vld [vmem:[#allocation6 + $0x4b8] sm:$0xff]  ;;  %v2904_v47 = vpack.c.bf16 %v505_v44, %v493_v43  ;;  %v557_v43 = vld [vmem:[#allocation6 + $0x5f0] sm:$0xff] }
  0xe2   : > { %2845 = vmatpush1.bf16.msra.mxu1 %v2844_v57  ;;  %v491_v57 = vld [vmem:[#allocation6 + $0x3e0] sm:$0xff]  ;;  %v534_v33 = vld [vmem:[#allocation6 + $0x538] sm:$0xff] }
  0xe3   : > { %2847 = vmatprep.subr.bf16.mxu1 %v2846_v61  ;;  %v2872_v61 = vpack.c.bf16 %v503_v58, %v491_v57  ;;  %v553_v57 = vld [vmem:[#allocation6 + $0x5d0] sm:$0xff]  ;;  %v378_v58 = vld [vmem:[#allocation6 + $0x58] sm:$0xff] }
  0xe4   : > { %932 = vmatmul.mubr.f32.vlgmr.msra.gmra.mrb[0].mxu0 %v3792_v56 }
  0xe5   : > { %937 = vmatprep.mubr.f32.mxu0 %v3509_v7 }
  0xe6   : > { %2849 = vmatpush1.bf16.msra.mxu1 %v2848_v6  ;;  %v539_v6 = vld [vmem:[#allocation6 + $0x560] sm:$0xff] }
  0xe7   : > { %2851 = vmatprep.subr.bf16.mxu1 %v2850_v9  ;;  %v374_v9 = vld [vmem:[#allocation6 + $0x38] sm:$0xff]  ;;  %v2880_v11 = vpack.c.bf16 %v551_v8, %v539_v6  ;;  %v413_v6 = vld [vmem:[#allocation6 + $0x170] sm:$0xff] }
  0xe8   : > { %938 = vmatmul.mubr.f32.gmra.mrb[2].mxu0 %v3797_v0  ;;  %v2882_v12 = vpack.c.bf16 %v386_v10, %v374_v9  ;;  %v426_v8 = vld [vmem:[#allocation6 + $0x1d8] sm:$0xff] }
  0xe9   : > { %701 = vmatmul.mubr.f32.vlgmr.msra.gmra.mrb[4].mxu1 %v3792_v56  ;;  %v438_v9 = vld [vmem:[#allocation6 + $0x238] sm:$0xff] }
  0xea   : > { %2853 = vmatpush1.bf16.msra.mxu1 %v2852_v19  ;;  %706 = vmatprep.mubr.f32.mxu1 %v3509_v7  ;;  %v397_v19 = vld [vmem:[#allocation6 + $0xf0] sm:$0xff] }
  0xeb   : > { %2855 = vmatprep.subr.bf16.mxu1 %v2854_v20  ;;  %v409_v20 = vld [vmem:[#allocation6 + $0x150] sm:$0xff] }
  0xec   : > { %v2888_v23 = vpack.c.bf16 %v409_v20, %v397_v19  ;;  %v461_v19 = vld [vmem:[#allocation6 + $0x2f0] sm:$0xff]  ;;  %v474_v20 = vld [vmem:[#allocation6 + $0x358] sm:$0xff] }
  0xed   : > { %707 = vmatmul.mubr.f32.gmra.mrb[6].mxu1 %v3797_v0 }
  0xee   : > { %2857 = vmatpush1.bf16.msra.mxu1 %v2856_v31  ;;  %777 = vmatprep.mubr.f32.mxu1 %v3509_v7  ;;  %v445_v31 = vld [vmem:[#allocation6 + $0x270] sm:$0xff] }
  0xef   : > { %2859 = vmatprep.subr.bf16.mxu1 %v2858_v32  ;;  %v457_v32 = vld [vmem:[#allocation6 + $0x2d0] sm:$0xff] }
  0xf0   : > { %v2896_v35 = vpack.c.bf16 %v457_v32, %v445_v31  ;;  %v509_v31 = vld [vmem:[#allocation6 + $0x470] sm:$0xff]  ;;  %v522_v32 = vld [vmem:[#allocation6 + $0x4d8] sm:$0xff] }
  0xf2   : > { %2861 = vmatpush1.bf16.msra.mxu1 %v2860_v41  ;;  %v2900_v41 = vpack.c.bf16 %v481_v38, %v469_v37  ;;  %v533_v37 = vld [vmem:[#allocation6 + $0x530] sm:$0xff]  ;;  %v546_v38 = vld [vmem:[#allocation6 + $0x598] sm:$0xff] }
  0xf3   : > { %2863 = vmatprep.subr.bf16.mxu1 %v2862_v42  ;;  %v2902_v42 = vpack.c.bf16 %v506_v40, %v494_v39  ;;  %v558_v39 = vld [vmem:[#allocation6 + $0x5f8] sm:$0xff] }
  0xf6   : > { %2865 = vmatpush1.bf16.msra.mxu1 %v2864_v48  ;;  %v2906_v48 = vpack.c.bf16 %v530_v46, %v518_v45 }
  0xf7   : > { %2867 = vmatprep.subr.bf16.mxu1 %v2866_v49  ;;  %v517_v49 = vld [vmem:[#allocation6 + $0x4b0] sm:$0xff] }
  0xf8   : > { %v2908_v53 = vpack.c.bf16 %v529_v50, %v517_v49 }
  0xfa   : > { %2869 = vmatpush1.bf16.msra.mxu1 %v2868_v54  ;;  %v2910_v54 = vpack.c.bf16 %v554_v52, %v542_v51 }
  0xfb   : > { %2871 = vmatprep.subr.bf16.mxu1 %v2870_v55  ;;  %v541_v55 = vld [vmem:[#allocation6 + $0x570] sm:$0xff] }
  0xfc   : > { %v2912_v60 = vpack.c.bf16 %v553_v57, %v541_v55 }
  0xfe   : > { %2873 = vmatpush1.bf16.msra.mxu1 %v2872_v61  ;;  %v2946_v61 = vpack.c.bf16 %v390_v59, %v378_v58 }
  0xff   : > { %2875 = vmatprep.subr.bf16.mxu1 %v2874_v62  ;;  %v377_v62 = vld [vmem:[#allocation6 + $0x50] sm:$0xff] }
 0x100   : > { %v2948_v3 = vpack.c.bf16 %v389_v63, %v377_v62 }
 0x102   : > { %2877 = vmatpush1.bf16.msra.mxu1 %v2876_v4  ;;  %v2950_v4 = vpack.c.bf16 %v414_v2, %v402_v1 }
 0x103   : > { %2879 = vmatprep.subr.bf16.mxu1 %v2878_v5  ;;  %v401_v5 = vld [vmem:[#allocation6 + $0x110] sm:$0xff] }
 0x104   : > { %v2952_v10 = vpack.c.bf16 %v413_v6, %v401_v5 }
 0x106   : > { %2881 = vmatpush1.bf16.msra.mxu1 %v2880_v11  ;;  %v2954_v11 = vpack.c.bf16 %v438_v9, %v426_v8 }
 0x107   : > { %2883 = vmatprep.subr.bf16.mxu1 %v2882_v12  ;;  %v425_v12 = vld [vmem:[#allocation6 + $0x1d0] sm:$0xff] }
 0x108   : > { %v2956_v16 = vpack.c.bf16 %v437_v13, %v425_v12 }
 0x109   : > { %778 = vmatmul.mubr.f32.vlgmr.msra.gmra.mrb[8].mxu1 %v3792_v56 }
 0x10a   : > { %2885 = vmatpush1.bf16.msra.mxu1 %v2884_v17  ;;  %783 = vmatprep.mubr.f32.mxu1 %v3509_v7  ;;  %v2958_v17 = vpack.c.bf16 %v462_v15, %v450_v14 }
 0x10b   : > { %2887 = vmatprep.subr.bf16.mxu1 %v2886_v18  ;;  %v449_v18 = vld [vmem:[#allocation6 + $0x290] sm:$0xff] }
 0x10c   : > { %v2960_v22 = vpack.c.bf16 %v461_v19, %v449_v18 }
 0x10d   : > { %784 = vmatmul.mubr.f32.gmra.mrb[10].mxu1 %v3797_v0 }
 0x10e   : > { %2889 = vmatpush1.bf16.msra.mxu1 %v2888_v23  ;;  %854 = vmatprep.mubr.f32.mxu1 %v3509_v7  ;;  %v2962_v23 = vpack.c.bf16 %v486_v21, %v474_v20 }
 0x10f   : > { %2891 = vmatprep.subr.bf16.mxu1 %v2890_v24  ;;  %v473_v24 = vld [vmem:[#allocation6 + $0x350] sm:$0xff] }
 0x110   : > { %v2964_v28 = vpack.c.bf16 %v485_v25, %v473_v24 }
 0x112   : > { %2893 = vmatpush1.bf16.msra.mxu1 %v2892_v29  ;;  %v2966_v29 = vpack.c.bf16 %v510_v27, %v498_v26 }
 0x113   : > { %2895 = vmatprep.subr.bf16.mxu1 %v2894_v30  ;;  %v497_v30 = vld [vmem:[#allocation6 + $0x410] sm:$0xff] }
 0x114   : > { %v2968_v34 = vpack.c.bf16 %v509_v31, %v497_v30 }
 0x116   : > { %2897 = vmatpush1.bf16.msra.mxu1 %v2896_v35  ;;  %v2970_v35 = vpack.c.bf16 %v534_v33, %v522_v32 }
 0x117   : > { %2899 = vmatprep.subr.bf16.mxu1 %v2898_v36  ;;  %v521_v36 = vld [vmem:[#allocation6 + $0x4d0] sm:$0xff] }
 0x118   : > { %v2972_v40 = vpack.c.bf16 %v533_v37, %v521_v36 }
 0x11a   : > { %2901 = vmatpush1.bf16.msra.mxu1 %v2900_v41  ;;  %v2974_v41 = vpack.c.bf16 %v558_v39, %v546_v38 }
 0x11b   : > { %2903 = vmatprep.subr.bf16.mxu1 %v2902_v42  ;;  %v545_v42 = vld [vmem:[#allocation6 + $0x590] sm:$0xff] }
 0x11c   : > { %v2976_v44 = vpack.c.bf16 %v557_v43, %v545_v42 }
 0x11e   : > { %2905 = vmatpush1.bf16.msra.mxu1 %v2904_v47 }
 0x11f   : > { %2907 = vmatprep.subr.bf16.mxu1 %v2906_v48 }
 0x122   : > { %2909 = vmatpush1.bf16.msra.mxu1 %v2908_v53 }
 0x123   : > { %2911 = vmatprep.subr.bf16.mxu1 %v2910_v54 }
 0x126   : > { %2913 = vmatpush1.bf16.msra.mxu1 %v2912_v60 }
 0x127   : > { %2947 = vmatprep.subr.bf16.mxu1 %v2946_v61 }
 0x129   : > { %855 = vmatmul.mubr.f32.vlgmr.msra.gmra.mrb[12].mxu1 %v3792_v56 }
 0x12a   : > { %860 = vmatprep.mubr.f32.mxu1 %v3509_v7  ;;  %2949 = vmatpush1.bf16.msra.mxu1 %v2948_v3 }
 0x12b   : > { %2951 = vmatprep.subr.bf16.mxu1 %v2950_v4 }
 0x12d   : > { %861 = vmatmul.mubr.f32.gmra.mrb[14].mxu1 %v3797_v0 }
 0x12e   : > { %2953 = vmatpush1.bf16.msra.mxu1 %v2952_v10  ;;  %1008 = vmatprep.mubr.f32.mxu1 %v3509_v7 }
 0x12f   : > { %2955 = vmatprep.subr.bf16.mxu1 %v2954_v11 }
 0x132   : > { %2957 = vmatpush1.bf16.msra.mxu1 %v2956_v16 }
 0x133   : > { %2959 = vmatprep.subr.bf16.mxu1 %v2958_v17 }
 0x136   : > { %2961 = vmatpush1.bf16.msra.mxu1 %v2960_v22 }
 0x137   : > { %2963 = vmatprep.subr.bf16.mxu1 %v2962_v23 }
 0x13a   : > { %2965 = vmatpush1.bf16.msra.mxu1 %v2964_v28 }
 0x13b   : > { %2967 = vmatprep.subr.bf16.mxu1 %v2966_v29 }
 0x13e   : > { %2969 = vmatpush1.bf16.msra.mxu1 %v2968_v34 }
 0x13f   : > { %2971 = vmatprep.subr.bf16.mxu1 %v2970_v35 }
 0x142   : > { %2973 = vmatpush1.bf16.msra.mxu1 %v2972_v40 }
 0x143   : > { %2975 = vmatprep.subr.bf16.mxu1 %v2974_v41 }
 0x146   : > { %2977 = vmatpush1.bf16.msra.mxu1 %v2976_v44 }
 0x149   : > { %1009 = vmatmul.mubr.f32.vlgmr.msra.gmra.mrb[16].mxu1 %v3792_v56 }
 0x14a   : > { %1014 = vmatprep.mubr.f32.mxu1 %v3509_v7 }
 0x14d   : > { %1015 = vmatmul.mubr.f32.gmra.mrb[18].mxu1 %v3797_v0 }
 0x19c   : > { %v625_v45 = vpop.f32.mrb[0].mxu1 }
 0x19d   : > { %v627_v46 = vpop.f32.mrb[1].mxu1  ;;  %2594 = vmatprep.mubr.f32.mxu0 %v625_v45 }
 0x19e   : > { %2601 = vmatprep.mubr.f32.mxu1 %v627_v46 }
 0x1a0   : > { %v631_v47 = vpop.f32.mrb[2].mxu1 }
 0x1a1   : > { %v633_v48 = vpop.f32.mrb[3].mxu1 }
 0x1b7   : > { %v933_v53 = vpop.f32.mrb[0].mxu0 }
 0x1b8   : > { %v935_v54 = vpop.f32.mrb[1].mxu0 }
 0x1bb   : > { %v939_v55 = vpop.f32.mrb[2].mxu0 }
 0x1bc   : > { %v702_v49 = vpop.f32.mrb[4].mxu1  ;;  %v2994_v57 = vpack.c.bf16 %v939_v55, %v933_v53  ;;  %v941_v58 = vpop.f32.mrb[3].mxu0 }
 0x1bd   : > { %v704_v50 = vpop.f32.mrb[5].mxu1  ;;  %v3819_v56 = vpack.c.bf16 %v941_v58, %v935_v54 }
 0x1c0   : > { %v708_v51 = vpop.f32.mrb[6].mxu1 }
 0x1c1   : > { %v710_v52 = vpop.f32.mrb[7].mxu1 }
 0x1dc   : > { %v779_v7 = vpop.f32.mrb[8].mxu1 }
 0x1dd   : > { %v781_v59 = vpop.f32.mrb[9].mxu1 }
 0x1e0   : > { %v785_v0 = vpop.f32.mrb[10].mxu1 }
 0x1e1   : > { %v2978_v60 = vpack.c.bf16 %v785_v0, %v779_v7  ;;  %v787_v61 = vpop.f32.mrb[11].mxu1 }
 0x1e2   : > { %v2982_v62 = vpack.c.bf16 %v787_v61, %v781_v59 }
 0x1e3   : > { %2979 = vmatprep.subr.bf16.mxu0 %v2978_v60 }
 0x1e4   : > { %2981 = vmatpush3.bf16.xpose.msra.mxu0 %v2978_v60  ;;  %2983 = vmatprep.subr.bf16.mxu1 %v2982_v62 }
 0x1e5   : > { %2985 = vmatpush3.bf16.xpose.msra.mxu1 %v2982_v62 }
 0x1eb   : > { %2595 = vmatmul.mubr.f32.vlgmr.msra.gmra.mrb[4].mxu0 %v631_v47 }
 0x1ec   : > { %2602 = vmatmul.mubr.f32.vlgmr.msra.gmra.mrb[20].mxu1 %v633_v48  ;;  %2608 = vmatprep.mubr.f32.mxu0 %v702_v49 }
 0x1ed   : > { %2615 = vmatprep.mubr.f32.mxu1 %v704_v50 }
 0x1fc   : > { %v856_v63 = vpop.f32.mrb[12].mxu1 }
 0x1fd   : > { %v858_v1 = vpop.f32.mrb[13].mxu1 }
 0x200   : > { %v862_v2 = vpop.f32.mrb[14].mxu1 }
 0x201   : > { %v2986_v3 = vpack.c.bf16 %v862_v2, %v856_v63  ;;  %v864_v4 = vpop.f32.mrb[15].mxu1 }
 0x202   : > { %v2990_v5 = vpack.c.bf16 %v864_v4, %v858_v1 }
 0x203   : > { %2987 = vmatprep.subr.bf16.mxu0 %v2986_v3 }
 0x204   : > { %2989 = vmatpush3.bf16.xpose.msra.mxu0 %v2986_v3  ;;  %2991 = vmatprep.subr.bf16.mxu1 %v2990_v5 }
 0x205   : > { %2993 = vmatpush3.bf16.xpose.msra.mxu1 %v2990_v5  ;;  %2995 = vmatprep.subr.bf16.mxu0 %v2994_v57 }
 0x20b   : > { %2609 = vmatmul.mubr.f32.vlgmr.msra.gmra.mrb[6].mxu0 %v708_v51 }
 0x20c   : > { %2616 = vmatmul.mubr.f32.vlgmr.msra.gmra.mrb[22].mxu1 %v710_v52  ;;  %2997 = vmatpush3.bf16.msra.mxu0 %v2994_v57 }
 0x20d   : > { %2999 = vmatprep.subr.bf16.mxu0 %v3819_v56 }
 0x21c   : > { %v1010_v6 = vpop.f32.mrb[16].mxu1 }
 0x21d   : > { %v1012_v8 = vpop.f32.mrb[17].mxu1 }
 0x220   : > { %v1016_v9 = vpop.f32.mrb[18].mxu1 }
 0x221   : > { %v3066_v10 = vpack.c.bf16 %v1016_v9, %v1010_v6  ;;  %v1018_v11 = vpop.f32.mrb[19].mxu1 }
 0x222   : > { %v3822_v12 = vpack.c.bf16 %v1018_v11, %v1012_v8 }
 0x223   : > { %3067 = vmatprep.subr.bf16.mxu1 %v3066_v10 }
 0x224   : > { %3069 = vmatpush3.bf16.msra.mxu1 %v3066_v10 }
 0x225   : > { %3103 = vmatprep.subr.bf16.mxu1 %v3822_v12 }
 0x2be   : > { %v2596_v13 = vpop.f32.mrb[4].mxu0 }
 0x2bf   : > { %v1097_v14 = vmul.f32 0.088388346, %v2596_v13  ;;  %v1087_v15 = vpop.f32.mrb[5].mxu0  ;;  %v2603_v16 = vpop.f32.mrb[20].mxu1 }
 0x2c0   : > { %v1096_v17 = vmul.f32 0.088388346, %v1087_v15  ;;  %v1189_v18 = vpop.f32.mrb[21].mxu1  ;;  %v1199_v19 = vmul.f32 0.088388346, %v2603_v16 }
 0x2c1   : > { %v1102_v20 = vsel %vm1098_vm0, %v1097_v14, -inf  ;;  %v1198_v21 = vmul.f32 0.088388346, %v1189_v18 }
 0x2c2   : > { %1103 = vmax.xlane.f32.xlu1 %v1102_v20  ;;  %v1099_v22 = vsel %vm1098_vm0, %v1096_v17, -inf  ;;  %v1203_v23 = vsel %vm1098_vm0, %v1199_v19, -inf }
 0x2c3   : > { %1100 = vmax.xlane.f32.xlu0 %v1099_v22  ;;  %v1200_v24 = vsel %vm1098_vm0, %v1198_v21, -inf }
 0x2c6   : > { %1204 = vmax.xlane.f32.xlu1 %v1203_v23 }
 0x2c7   : > { %1201 = vmax.xlane.f32.xlu0 %v1200_v24 }
 0x2de   : > { %v2610_v25 = vpop.f32.mrb[6].mxu0 }
 0x2df   : > { %v1300_v26 = vmul.f32 0.088388346, %v2610_v25  ;;  %v1290_v27 = vpop.f32.mrb[7].mxu0  ;;  %v2617_v28 = vpop.f32.mrb[22].mxu1  ;;  %v1427_v25 = vstv %s3865_s8  ;;  %s3925_s8 = sld [smem:[#allocation11]] }
 0x2e0   : > { %v1299_v29 = vmul.f32 0.088388346, %v1290_v27  ;;  %v1391_v30 = vpop.f32.mrb[23].mxu1  ;;  %v1401_v31 = vmul.f32 0.088388346, %v2617_v28  ;;  %v1471_v27 = vstv %s3869_s16  ;;  %v1493_v28 = vstv %s3871_s23  ;;  %s3929_s16 = sld [smem:[#allocation11 + $0x1]] }
 0x2e1   : > { %v1304_v32 = vsel %vm1098_vm0, %v1300_v26, -inf  ;;  %v1400_v33 = vmul.f32 0.088388346, %v1391_v30  ;;  %s3931_s23 = sld [smem:[#allocation11 + $0x3]] }
 0x2e2   : > { %1305 = vmax.xlane.f32.xlu1 %v1304_v32  ;;  %v1301_v34 = vsel %vm1098_vm0, %v1299_v29, -inf  ;;  %v1405_v35 = vsel %vm1098_vm0, %v1401_v31, -inf  ;;  %v1453_v32 = vstv %s3875_s14 }
 0x2e3   : > { %1302 = vmax.xlane.f32.xlu0 %v1301_v34  ;;  %v1402_v36 = vsel %vm1098_vm0, %v1400_v33, -inf  ;;  %v1475_v34 = vstv %s3877_s20 }
 0x2e6   : > { %1406 = vmax.xlane.f32.xlu1 %v1405_v35  ;;  %v1497_v35 = vstv %s3879_s21 }
 0x2e7   : > { %1403 = vmax.xlane.f32.xlu0 %v1402_v36 }
 0x34f   : > { %v1104_v37 = vpop.xlane.xlu1 %1103 }
 0x350   : > { %v1106_v38 = vsub.f32 %v1097_v14, %v1104_v37  ;;  %v1101_v39 = vpop.xlane.xlu0 %1100 }
 0x351   : > { %v1105_v40 = vsub.f32 %v1096_v17, %v1101_v39  ;;  %v1437_v39 = vstv %s3881_s18 }
 0x352   : > { %v1109_v41 = vmul.f32 1.442695, %v1106_v38 }
 0x353   : > { %v1107_v42 = vmul.f32 1.442695, %v1105_v40  ;;  %v1205_v43 = vpop.xlane.xlu1 %1204  ;;  %v1459_v40 = vstv %s3883_s22  ;;  %s2485_s22 = sshll.u32 %s3574_s30, 8  ;;  %s3510_s30 = smov [#allocation13]  }
 0x354   : > { %3248 = vpow2.f32 %v1109_v41  ;;  %v1207_v44 = vsub.f32 %v1199_v19, %v1205_v43  ;;  %v1202_v45 = vpop.xlane.xlu0 %1201  ;;  %v1481_v41 = vstv %s3885_s17  ;;  %v1443_v43 = vstv %s3889_s9  ;;  %s2474_s9 = sld [smem:[#allocation9 + $0x3]] }
 0x355   : > { %v1206_v46 = vsub.f32 %v1198_v21, %v1202_v45  ;;  %3250 = vpow2.f32 %v1107_v42  ;;  %v1503_v42 = vstv %s3887_s11 }
 0x356   : > { %v1210_v47 = vmul.f32 1.442695, %v1207_v44  ;;  %v1465_v44 = vstv %s3891_s0  ;;  %s1550_s0 = sld [smem:[#allocation9]] }
 0x357   : > { %v1208_v48 = vmul.f32 1.442695, %v1206_v46 }
 0x358   : > { %3252 = vpow2.f32 %v1210_v47  ;;  %v1487_v47 = vstv %s3893_s1  ;;  %s2470_s1 = sld [smem:[#allocation9 + $0x2]] }
 0x359   : > { %3254 = vpow2.f32 %v1208_v48  ;;  %v1509_v48 = vstv %s3895_s2  ;;  %s2466_s2 = sld [smem:[#allocation9 + $0x1]] }
 0x35e   : > { %v3833_v49 = vpop.eup %3248 }
 0x35f   : > { %v1114_v50 = vsel %vm1098_vm0, %v3833_v49, 0.0  ;;  %v3837_v51 = vpop.eup %3250 }
 0x360   : > { %1115 = vadd.xlane.f32.xlu0 %v1114_v50  ;;  %v1111_v54 = vsel %vm1098_vm0, %v3837_v51, 0.0 }
 0x362   : > { %v3839_v52 = vpop.eup %3252 }
 0x363   : > { %v1215_v53 = vsel %vm1098_vm0, %v3839_v52, 0.0  ;;  %v3845_v55 = vpop.eup %3254 }
 0x364   : > { %1216 = vadd.xlane.f32.xlu1 %v1215_v53  ;;  %1112 = vadd.xlane.f32.xlu0 %v1111_v54  ;;  %v1212_v57 = vsel %vm1098_vm0, %v3845_v55, 0.0 }
 0x368   : > { %1213 = vadd.xlane.f32.xlu1 %v1212_v57 }
 0x36f   : > { %v1306_v58 = vpop.xlane.xlu1 %1305 }
 0x370   : > { %v1308_v7 = vsub.f32 %v1300_v26, %v1306_v58  ;;  %v1303_v59 = vpop.xlane.xlu0 %1302  ;;  %v1449_v26 = vstv %s3867_s28  ;;  %s3927_s28 = sld [smem:[#allocation11 + $0x2]] }
 0x371   : > { %v1307_v0 = vsub.f32 %v1299_v29, %v1303_v59 }
 0x372   : > { %v1311_v60 = vmul.f32 1.442695, %v1308_v7 }
 0x373   : > { %v1309_v61 = vmul.f32 1.442695, %v1307_v0  ;;  %v1407_v62 = vpop.xlane.xlu1 %1406 }
 0x374   : > { %3256 = vpow2.f32 %v1311_v60  ;;  %v1409_v63 = vsub.f32 %v1401_v31, %v1407_v62  ;;  %v1404_v1 = vpop.xlane.xlu0 %1403  ;;  %v1431_v31 = vstv %s3873_s15  ;;  %s4049_s15 = sshll.u32 %s3761_s29, 4 }
 0x375   : > { %3258 = vpow2.f32 %v1309_v61  ;;  %v1408_v2 = vsub.f32 %v1400_v33, %v1404_v1  ;;  %s364_s14 = scalar_lea.vmem [#allocation13], %s4049_s15 }
 0x376   : > { %v1412_v3 = vmul.f32 1.442695, %v1409_v63  ;;  %s2307_s20 = sshll.u32 %s364_s14, 4  ;;  %s3963_s20 = int_to_ptr.vmem [resolvable:$true] %s2307_s20 }
 0x377   : > { %v1410_v4 = vmul.f32 1.442695, %v1408_v2 }
 0x378   : > { %3260 = vpow2.f32 %v1412_v3 }
 0x379   : > { %3262 = vpow2.f32 %v1410_v4 }
 0x37e   : > { %v3849_v5 = vpop.eup %3256 }
 0x37f   : > { %v3851_v6 = vpop.eup %3258  ;;  %v1316_v8 = vsel %vm1098_vm0, %v3849_v5, 0.0 }
 0x380   : > { %1317 = vadd.xlane.f32.xlu1 %v1316_v8  ;;  %v1313_v9 = vsel %vm1098_vm0, %v3851_v6, 0.0 }
 0x381   : > { %1314 = vadd.xlane.f32.xlu0 %v1313_v9 }
 0x382   : > { %v3857_v10 = vpop.eup %3260 }
 0x383   : > { %v3859_v11 = vpop.eup %3262  ;;  %v1417_v13 = vsel %vm1098_vm0, %v3857_v10, 0.0 }
 0x384   : > { %1418 = vadd.xlane.f32.xlu1 %v1417_v13  ;;  %v1414_v14 = vsel %vm1098_vm0, %v3859_v11, 0.0 }
 0x385   : > { %1415 = vadd.xlane.f32.xlu0 %v1414_v14 }
 0x3ed   : > { %v1116_v15 = vpop.xlane.xlu0 %1115 }
 0x3ee   : > { %3264 = vrcp.f32 %v1116_v15 }
 0x3f1   : > { %v1217_v16 = vpop.xlane.xlu1 %1216  ;;  %v1113_v17 = vpop.xlane.xlu0 %1112 }
 0x3f2   : > { %3266 = vrcp.f32 %v1217_v16 }
 0x3f3   : > { %3268 = vrcp.f32 %v1113_v17 }
 0x3f5   : > { %v1214_v18 = vpop.xlane.xlu1 %1213 }
 0x3f6   : > { %3270 = vrcp.f32 %v1214_v18 }
 0x3f8   : > { %v3265_v20 = vpop.eup %3264 }
 0x3f9   : > { %v1122_v30 = vmul.f32 %v3265_v20, %v3833_v49 }
 0x3fb   : > { %v1429_v45 = vmul.f32 %v1427_v25, %v1122_v30  ;;  %v1451_v46 = vmul.f32 %v1449_v26, %v1122_v30  ;;  %v1473_v49 = vmul.f32 %v1471_v27, %v1122_v30  ;;  %v1495_v50 = vmul.f32 %v1493_v28, %v1122_v30 }
 0x3fc   : > { %v3267_v22 = vpop.eup %3266 }
 0x3fd   : > { %v3269_v23 = vpop.eup %3268  ;;  %v1223_v36 = vmul.f32 %v3267_v22, %v3839_v52 }
 0x3fe   : > { %v1121_v37 = vmul.f32 %v3269_v23, %v3837_v51 }
 0x3ff   : > { %v1433_v53 = vmul.f32 %v1431_v31, %v1223_v36  ;;  %v1455_v54 = vmul.f32 %v1453_v32, %v1223_v36  ;;  %v1477_v57 = vmul.f32 %v1475_v34, %v1223_v36  ;;  %v1499_v58 = vmul.f32 %v1497_v35, %v1223_v36 }
 0x400   : > { %v3271_v24 = vpop.eup %3270  ;;  %v1450_v51 = vmul.f32 %v1449_v26, %v1121_v37  ;;  %v1472_v62 = vmul.f32 %v1471_v27, %v1121_v37  ;;  %v1494_v63 = vmul.f32 %v1493_v28, %v1121_v37  ;;  %v1428_v2 = vmul.f32 %v1427_v25, %v1121_v37 }
 0x401   : > { %v1222_v38 = vmul.f32 %v3271_v24, %v3845_v55  ;;  %v1435_v3 = vadd.f32 %v1433_v53, %v1429_v45  ;;  %v1457_v4 = vadd.f32 %v1455_v54, %v1451_v46  ;;  %v1479_v14 = vadd.f32 %v1477_v57, %v1473_v49 }
 0x402   : > { %v1501_v15 = vadd.f32 %v1499_v58, %v1495_v50 }
 0x403   : > { %v1476_v7 = vmul.f32 %v1475_v34, %v1222_v38  ;;  %v1454_v59 = vmul.f32 %v1453_v32, %v1222_v38  ;;  %v1498_v0 = vmul.f32 %v1497_v35, %v1222_v38  ;;  %v1432_v61 = vmul.f32 %v1431_v31, %v1222_v38 }
 0x405   : > { %v1478_v16 = vadd.f32 %v1476_v7, %v1472_v62 }
 0x40d   : > { %v1318_v19 = vpop.xlane.xlu1 %1317 }
 0x40e   : > { %3272 = vrcp.f32 %v1318_v19  ;;  %v1315_v21 = vpop.xlane.xlu0 %1314  ;;  %v1500_v19 = vadd.f32 %v1498_v0, %v1494_v63 }
 0x40f   : > { %3274 = vrcp.f32 %v1315_v21  ;;  %v1434_v21 = vadd.f32 %v1432_v61, %v1428_v2 }
 0x411   : > { %v1419_v29 = vpop.xlane.xlu1 %1418 }
 0x412   : > { %3276 = vrcp.f32 %v1419_v29  ;;  %v1416_v33 = vpop.xlane.xlu0 %1415 }
 0x413   : > { %3278 = vrcp.f32 %v1416_v33 }
 0x418   : > { %v3273_v52 = vpop.eup %3272 }
 0x419   : > { %v3275_v55 = vpop.eup %3274  ;;  %v1324_v60 = vmul.f32 %v3273_v52, %v3849_v5  ;;  %v1456_v5 = vadd.f32 %v1454_v59, %v1450_v51 }
 0x41a   : > { %v1323_v1 = vmul.f32 %v3275_v55, %v3851_v6 }
 0x41b   : > { %v1439_v8 = vmul.f32 %v1437_v39, %v1324_v60  ;;  %v1461_v9 = vmul.f32 %v1459_v40, %v1324_v60  ;;  %v1483_v22 = vmul.f32 %v1481_v41, %v1324_v60  ;;  %v1505_v23 = vmul.f32 %v1503_v42, %v1324_v60 }
 0x41c   : > { %v3277_v13 = vpop.eup %3276  ;;  %v1438_v17 = vmul.f32 %v1437_v39, %v1323_v1  ;;  %v1460_v20 = vmul.f32 %v1459_v40, %v1323_v1  ;;  %v1482_v27 = vmul.f32 %v1481_v41, %v1323_v1  ;;  %v1504_v28 = vmul.f32 %v1503_v42, %v1323_v1 }
 0x41d   : > { %v3279_v18 = vpop.eup %3278  ;;  %v1425_v24 = vmul.f32 %v3277_v13, %v3857_v10  ;;  %v1441_v25 = vadd.f32 %v1439_v8, %v1435_v3  ;;  %v1463_v26 = vadd.f32 %v1461_v9, %v1457_v4  ;;  %v1485_v37 = vadd.f32 %v1483_v22, %v1479_v14 }
 0x41e   : > { %v1424_v6 = vmul.f32 %v3279_v18, %v3859_v11  ;;  %v1440_v32 = vadd.f32 %v1438_v17, %v1434_v21  ;;  %v1462_v36 = vadd.f32 %v1460_v20, %v1456_v5  ;;  %v1484_v11 = vadd.f32 %v1482_v27, %v1478_v16 }
 0x41f   : > { %v1445_v29 = vmul.f32 %v1443_v43, %v1425_v24  ;;  %v1467_v30 = vmul.f32 %v1465_v44, %v1425_v24  ;;  %v1489_v31 = vmul.f32 %v1487_v47, %v1425_v24  ;;  %v1511_v40 = vmul.f32 %v1509_v48, %v1425_v24 }
 0x420   : > { %v1466_v33 = vmul.f32 %v1465_v44, %v1424_v6  ;;  %v1488_v34 = vmul.f32 %v1487_v47, %v1424_v6  ;;  %v1444_v35 = vmul.f32 %v1443_v43, %v1424_v6  ;;  %v1510_v45 = vmul.f32 %v1509_v48, %v1424_v6 }
 0x421   : > { %v1447_v38 = vadd.f32 %v1445_v29, %v1441_v25  ;;  %v1469_v39 = vadd.f32 %v1467_v30, %v1463_v26  ;;  %v1507_v49 = vadd.f32 %v1505_v23, %v1501_v15  ;;  %v1491_v50 = vadd.f32 %v1489_v31, %v1485_v37 }
 0x422   : > { %v1446_v10 = vadd.f32 %v1444_v35, %v1440_v32  ;;  %v1468_v46 = vadd.f32 %v1466_v33, %v1462_v36  ;;  %v1506_v42 = vadd.f32 %v1504_v28, %v1500_v19  ;;  %v1490_v53 = vadd.f32 %v1488_v34, %v1484_v11 }
 0x423   : > { %v1515_v41 = vadd.f32 %v1469_v39, %v1447_v38  ;;  %v1513_v52 = vadd.f32 %v1511_v40, %v1507_v49  ;;  %v1551_v24 = vstv %s1550_s0  ;;  %v1915_v6 = vstv %s2470_s1  ;;  %v1748_v49 = vld [vmem:[#allocation12 + $0x80] sm:$0xff]  ;;  %s3968_s0 = scalar_lea.hbm %s4019_s7, %s2485_s22  ;;  %s2294_s1 = scalar_lea.sflag [#allocation4], %s3761_s29 }
 0x424   : > { %v1514_v54 = vadd.f32 %v1468_v46, %v1446_v10  ;;  %v1512_v44 = vadd.f32 %v1510_v45, %v1506_v42  ;;  %v1658_v25 = vstv %s2466_s2  ;;  %v2099_v26 = vstv %s2474_s9  ;;  %s3415_s2 = scalar_lea.vmem %s3963_s20, 256  ;;  %s3419_s9 = sshll.u32 %s3510_s30, 4  ;;  %s3420_s9 = int_to_ptr.vmem [resolvable:$false] %s3419_s9 }
 0x425   : > { %v1517_v57 = vadd.f32 %v1515_v41, %v1491_v50  ;;  %v1557_v30 = vstv %s3925_s8  ;;  %v1921_v32 = vstv %s3927_s28  ;;  %p3416_p10 = scmp.ne.s32.totalorder %s3963_s20, %s3415_s2  ;;  %s3421_s8 = scalar_lea.vmem %s3420_s9, 512 }
 0x426   : > { %v1516_v47 = vadd.f32 %v1514_v54, %v1490_v53  ;;  %v2105_v54 = vstv %s3931_s23  ;;  %p3422_p4 = scmp.lt.s32.totalorder %s3963_s20, %s3420_s9  ;;  %p3423_p1 = scmp.lt.s32.totalorder %s3421_s8, %s3415_s2 }
 0x427   : > { %v1519_v43 = vadd.f32 %v1517_v57, %v1513_v52  ;;  %p3417_p11 = pnand %p3416_p10, %p4050_p3 }
 0x428   : > { %v1518_v58 = vadd.f32 %v1516_v47, %v1512_v44  ;;  %p3424_p6 = por %p3423_p1, %p3422_p4 }
 0x429   : > { %v1521_v51 = vmul.f32 0.25, %v1519_v43  ;;  %p3418_p12 = pneg %p3417_p11 }
 0x42a   : > { %v1520_v7 = vmul.f32 0.25, %v1518_v58  ;;  %v1750_v58 = vld [vmem:[#allocation12 + $0x90] sm:$0xff] }
 0x42b   : > { %v1527_v55 = vsub.f32 %v1491_v50, %v1521_v51  ;;  %v1523_v59 = vsub.f32 %v1447_v38, %v1521_v51  ;;  %v3921_v48 = vsub.f32 %v1469_v39, %v1521_v51  ;;  %v1529_v62 = vsub.f32 %v1513_v52, %v1521_v51  ;;  %v1749_v50 = vld [vmem:[#allocation12 + $0x88] sm:$0xff]  ;;  %v1751_v51 = vld [vmem:[#allocation12 + $0x98] sm:$0xff]  ;;  %p3425_p7 = pnand %p3424_p6, %p3418_p12 }
 0x42c   : > { %v1522_v0 = vsub.f32 %v1446_v10, %v1520_v7  ;;  %v1524_v60 = vsub.f32 %v1468_v46, %v1520_v7  ;;  %v1526_v61 = vsub.f32 %v1490_v53, %v1520_v7  ;;  %v1528_v2 = vsub.f32 %v1512_v44, %v1520_v7 }
 0x42d   : > { %v1531_v63 = vmul.f32 %v1523_v59, %v1523_v59  ;;  %v1533_v1 = vmul.f32 %v3921_v48, %v3921_v48  ;;  %v1537_v9 = vmul.f32 %v1527_v55, %v1527_v55  ;;  %v1541_v16 = vmul.f32 %v1529_v62, %v1529_v62 }
 0x42e   : > { %v1530_v3 = vmul.f32 %v1522_v0, %v1522_v0  ;;  %v1532_v4 = vmul.f32 %v1524_v60, %v1524_v60  ;;  %v1536_v14 = vmul.f32 %v1526_v61, %v1526_v61  ;;  %v1540_v18 = vmul.f32 %v1528_v2, %v1528_v2 }
 0x42f   : > { %v1535_v8 = vadd.f32 %v1533_v1, %v1531_v63  ;;  %v1664_v53 = vstv %s3929_s16  ;;  %v3002_v43 = vpack.c.bf16 %v1749_v50, %v1748_v49  ;;  %v1755_v63 = vld [vmem:[#allocation12 + $0xb8] sm:$0xff]  ;;  %v1756_v1 = vld [vmem:[#allocation12 + $0xc0] sm:$0xff]  ;;  %v1655_v50 = vld [vmem:[#allocation12 + $0x70] sm:$0xff] }
 0x430   : > { %v1534_v13 = vadd.f32 %v1532_v4, %v1530_v3  ;;  %v1758_v4 = vld [vmem:[#allocation12 + $0xd0] sm:$0xff] }
 0x431   : > { %v1539_v15 = vadd.f32 %v1537_v9, %v1535_v8  ;;  %v1759_v8 = vld [vmem:[#allocation12 + $0xd8] sm:$0xff] }
 0x432   : > { %v1538_v17 = vadd.f32 %v1536_v14, %v1534_v13  ;;  %v3022_v9 = vpack.c.bf16 %v1759_v8, %v1758_v4  ;;  %v1760_v13 = vld [vmem:[#allocation12 + $0xe0] sm:$0xff]  ;;  %v1761_v14 = vld [vmem:[#allocation12 + $0xe8] sm:$0xff] }
 0x433   : > { %v1543_v19 = vadd.f32 %v1541_v16, %v1539_v15  ;;  %v3026_v15 = vpack.c.bf16 %v1761_v14, %v1760_v13  ;;  %v1762_v16 = vld [vmem:[#allocation12 + $0xf0] sm:$0xff]  ;;  %v2189_v8 = vld [vmem:[#allocation12 + $0x180] sm:$0xff] }
 0x434   : > { %v1542_v20 = vadd.f32 %v1540_v18, %v1538_v17  ;;  %v1763_v17 = vld [vmem:[#allocation12 + $0xf8] sm:$0xff]  ;;  %v2191_v14 = vld [vmem:[#allocation12 + $0x190] sm:$0xff] }
 0x435   : > { %v1545_v21 = vmul.f32 0.25, %v1543_v19  ;;  %v3030_v18 = vpack.c.bf16 %v1763_v17, %v1762_v16  ;;  %v1641_v19 = vld [vmem:[#allocation12] sm:$0xff] }
 0x436   : > { %v1544_v5 = vmul.f32 0.25, %v1542_v20  ;;  %v1642_v20 = vld [vmem:[#allocation12 + $0x8] sm:$0xff]  ;;  %v2193_v17 = vld [vmem:[#allocation12 + $0x1a0] sm:$0xff] }
 0x437   : > { %v1547_v22 = vadd.f32 1e-05, %v1545_v21  ;;  %v3034_v21 = vpack.c.bf16 %v1642_v20, %v1641_v19  ;;  %v2195_v20 = vld [vmem:[#allocation12 + $0x1b0] sm:$0xff] }
 0x438   : > { %v1546_v23 = vadd.f32 1e-05, %v1544_v5 }
 0x439   : > { %3280 = vrsqrt.f32 %v1547_v22 }
 0x43a   : > { %3282 = vrsqrt.f32 %v1546_v23 }
 0x443   : > { %v3281_v27 = vpop.eup %3280 }
 0x444   : > { %v3283_v28 = vpop.eup %3282  ;;  %v1553_v29 = vmul.f32 %v3281_v27, %v1551_v24  ;;  %v1917_v31 = vmul.f32 %v3281_v27, %v1915_v6  ;;  %v1660_v39 = vmul.f32 %v3281_v27, %v1658_v25  ;;  %v2101_v40 = vmul.f32 %v3281_v27, %v2099_v26 }
 0x445   : > { %v1552_v33 = vmul.f32 %v3283_v28, %v1551_v24  ;;  %v1916_v34 = vmul.f32 %v3283_v28, %v1915_v6  ;;  %v1659_v35 = vmul.f32 %v3283_v28, %v1658_v25  ;;  %v2100_v36 = vmul.f32 %v3283_v28, %v2099_v26  ;;  %v1643_v6 = vld [vmem:[#allocation12 + $0x10] sm:$0xff]  ;;  %v1644_v25 = vld [vmem:[#allocation12 + $0x18] sm:$0xff] }
 0x446   : > { %v1555_v37 = vmul.f32 %v1553_v29, %v1523_v59  ;;  %v1919_v38 = vmul.f32 %v1917_v31, %v1527_v55  ;;  %v1662_v44 = vmul.f32 %v1660_v39, %v3921_v48  ;;  %v2103_v47 = vmul.f32 %v2101_v40, %v1529_v62  ;;  %v1645_v31 = vld [vmem:[#allocation12 + $0x20] sm:$0xff]  ;;  %v1651_v40 = vld [vmem:[#allocation12 + $0x50] sm:$0xff] }
 0x447   : > { %v1554_v45 = vmul.f32 %v1552_v33, %v1522_v0  ;;  %v1918_v10 = vmul.f32 %v1916_v34, %v1526_v61  ;;  %v1661_v46 = vmul.f32 %v1659_v35, %v1524_v60  ;;  %v2102_v11 = vmul.f32 %v2100_v36, %v1528_v2  ;;  %v1752_v60 = vld [vmem:[#allocation12 + $0xa0] sm:$0xff]  ;;  %v1753_v61 = vld [vmem:[#allocation12 + $0xa8] sm:$0xff]  ;;  %v1647_v34 = vld [vmem:[#allocation12 + $0x30] sm:$0xff] }
 0x448   : > { %v1559_v52 = vadd.f32 %v1557_v30, %v1555_v37  ;;  %v1923_v57 = vadd.f32 %v1921_v32, %v1919_v38  ;;  %v1666_v59 = vadd.f32 %v1664_v53, %v1662_v44  ;;  %v2107_v48 = vadd.f32 %v2105_v54, %v2103_v47  ;;  %v1757_v2 = vld [vmem:[#allocation12 + $0xc8] sm:$0xff]  ;;  %v1648_v35 = vld [vmem:[#allocation12 + $0x38] sm:$0xff]  ;;  %v1649_v37 = vld [vmem:[#allocation12 + $0x40] sm:$0xff] }
 0x449   : > { %v1558_v41 = vadd.f32 %v1557_v30, %v1554_v45  ;;  %v1922_v42 = vadd.f32 %v1921_v32, %v1918_v10  ;;  %v1665_v7 = vadd.f32 %v1664_v53, %v1661_v46  ;;  %v2106_v55 = vadd.f32 %v2105_v54, %v2102_v11  ;;  %v1646_v32 = vld [vmem:[#allocation12 + $0x28] sm:$0xff]  ;;  %v1652_v45 = vld [vmem:[#allocation12 + $0x58] sm:$0xff]  ;;  %v1653_v46 = vld [vmem:[#allocation12 + $0x60] sm:$0xff] }
 0x44a   : > { %v3006_v0 = vpack.c.bf16 %v1751_v51, %v1750_v58  ;;  %v3010_v62 = vpack.c.bf16 %v1753_v61, %v1752_v60  ;;  %v3018_v3 = vpack.c.bf16 %v1757_v2, %v1756_v1  ;;  %v3038_v30 = vpack.c.bf16 %v1644_v25, %v1643_v6  ;;  %v1650_v38 = vld [vmem:[#allocation12 + $0x48] sm:$0xff]  ;;  %v2005_v53 = vld [vmem:[#allocation12 + $0x100] sm:$0xff]  ;;  %v2008_v44 = vld [vmem:[#allocation12 + $0x118] sm:$0xff] }
 0x44b   : > { %2622 = vmatprep.mubr.msk.f32.mxu0 %vm1098_vm0, %v1558_v41  ;;  %2706 = vmatprep.mubr.msk.f32.mxu1 %vm1098_vm0, %v1922_v42  ;;  %v3042_v33 = vpack.c.bf16 %v1646_v32, %v1645_v31  ;;  %v3046_v36 = vpack.c.bf16 %v1648_v35, %v1647_v34  ;;  %v3050_v39 = vpack.c.bf16 %v1650_v38, %v1649_v37  ;;  %v1654_v11 = vld [vmem:[#allocation12 + $0x68] sm:$0xff]  ;;  %v1656_v41 = vld [vmem:[#allocation12 + $0x78] sm:$0xff]  ;;  %v2015_v61 = vld [vmem:[#allocation12 + $0x150] sm:$0xff] }
 0x44c   : > { %2623 = vmatmul.mubr.msk.f32.vlgmr.msra.gmra.mrb[8].mxu0 %vm1098_vm0, %v1559_v52  ;;  %2707 = vmatmul.mubr.msk.f32.vlgmr.msra.gmra.mrb[24].mxu1 %vm1098_vm0, %v1923_v57  ;;  %v3054_v10 = vpack.c.bf16 %v1652_v45, %v1651_v40  ;;  %v3058_v49 = vpack.c.bf16 %v1654_v11, %v1653_v46  ;;  %v3062_v42 = vpack.c.bf16 %v1656_v41, %v1655_v50  ;;  %v2006_v54 = vld [vmem:[#allocation12 + $0x108] sm:$0xff]  ;;  %v2007_v57 = vld [vmem:[#allocation12 + $0x110] sm:$0xff]  ;;  %v2204_v32 = vld [vmem:[#allocation12 + $0x1f8] sm:$0xff] }
 0x44d   : > { %3001 = vmatpush3.bf16.msra.mxu0 %v3819_v56  ;;  %3105 = vmatpush3.bf16.msra.mxu1 %v3822_v12  ;;  %v1754_v56 = vld [vmem:[#allocation12 + $0xb0] sm:$0xff]  ;;  %v3070_v52 = vpack.c.bf16 %v2006_v54, %v2005_v53  ;;  %v3074_v47 = vpack.c.bf16 %v2008_v44, %v2007_v57  ;;  %v2010_v58 = vld [vmem:[#allocation12 + $0x128] sm:$0xff]  ;;  %v2478_v34 = vld [vmem:[%s4018_s6] ss:$0 sm:$0xff] }
 0x44e   : > { %2629 = vmatprep.mubr.msk.f32.mxu0 %vm1098_vm0, %v1665_v7  ;;  %2748 = vmatprep.mubr.msk.f32.mxu1 %vm1098_vm0, %v2106_v55  ;;  %v3014_v12 = vpack.c.bf16 %v1755_v63, %v1754_v56  ;;  %v2011_v7 = vld [vmem:[#allocation12 + $0x130] sm:$0xff]  ;;  %v2012_v55 = vld [vmem:[#allocation12 + $0x138] sm:$0xff]  ;;  %v2017_v63 = vld [vmem:[#allocation12 + $0x160] sm:$0xff] }
 0x44f   : > { %3003 = vmatprep.subr.bf16.mxu0 %v3002_v43  ;;  %v2019_v2 = vld [vmem:[#allocation12 + $0x170] sm:$0xff] }
 0x450   : > { %2630 = vmatmul.mubr.msk.f32.vlgmr.msra.gmra.mrb[10].mxu0 %vm1098_vm0, %v1666_v59  ;;  %2749 = vmatmul.mubr.msk.f32.vlgmr.msra.gmra.mrb[26].mxu1 %vm1098_vm0, %v2107_v48  ;;  %v3082_v59 = vpack.c.bf16 %v2012_v55, %v2011_v7  ;;  %v2013_v48 = vld [vmem:[#allocation12 + $0x140] sm:$0xff]  ;;  %v2199_v25 = vld [vmem:[#allocation12 + $0x1d0] sm:$0xff] }
 0x451   : > { %3005 = vmatpush3.bf16.msra.mxu0 %v3002_v43  ;;  %v2009_v43 = vld [vmem:[#allocation12 + $0x120] sm:$0xff]  ;;  %v2203_v31 = vld [vmem:[#allocation12 + $0x1f0] sm:$0xff] }
 0x452   : > { %3007 = vmatprep.subr.bf16.mxu0 %v3006_v0  ;;  %v3078_v51 = vpack.c.bf16 %v2010_v58, %v2009_v43 }
 0x455   : > { %3009 = vmatpush3.bf16.msra.mxu0 %v3006_v0  ;;  %v2014_v0 = vld [vmem:[#allocation12 + $0x148] sm:$0xff] }
 0x456   : > { %3011 = vmatprep.subr.bf16.mxu0 %v3010_v62  ;;  %v3086_v60 = vpack.c.bf16 %v2014_v0, %v2013_v48 }
 0x459   : > { %3013 = vmatpush3.bf16.msra.mxu0 %v3010_v62  ;;  %v2016_v62 = vld [vmem:[#allocation12 + $0x158] sm:$0xff] }
 0x45a   : > { %3015 = vmatprep.subr.bf16.mxu0 %v3014_v12  ;;  %v3090_v56 = vpack.c.bf16 %v2016_v62, %v2015_v61 }
 0x45d   : > { %3017 = vmatpush3.bf16.msra.mxu0 %v3014_v12  ;;  %v2018_v12 = vld [vmem:[#allocation12 + $0x168] sm:$0xff] }
 0x45e   : > { %3019 = vmatprep.subr.bf16.mxu0 %v3018_v3  ;;  %v3094_v1 = vpack.c.bf16 %v2018_v12, %v2017_v63 }
 0x461   : > { %3021 = vmatpush3.bf16.msra.mxu0 %v3018_v3  ;;  %v2020_v3 = vld [vmem:[#allocation12 + $0x178] sm:$0xff] }
 0x462   : > { %3023 = vmatprep.subr.bf16.mxu0 %v3022_v9  ;;  %v3098_v4 = vpack.c.bf16 %v2020_v3, %v2019_v2 }
 0x465   : > { %3025 = vmatpush3.bf16.msra.mxu0 %v3022_v9  ;;  %v2190_v9 = vld [vmem:[#allocation12 + $0x188] sm:$0xff] }
 0x466   : > { %3027 = vmatprep.subr.bf16.mxu0 %v3026_v15  ;;  %v3106_v13 = vpack.c.bf16 %v2190_v9, %v2189_v8 }
 0x469   : > { %3029 = vmatpush3.bf16.msra.mxu0 %v3026_v15  ;;  %v2192_v15 = vld [vmem:[#allocation12 + $0x198] sm:$0xff] }
 0x46a   : > { %3031 = vmatprep.subr.bf16.mxu0 %v3030_v18  ;;  %v3110_v16 = vpack.c.bf16 %v2192_v15, %v2191_v14 }
 0x46d   : > { %3033 = vmatpush3.bf16.msra.mxu0 %v3030_v18  ;;  %v2194_v18 = vld [vmem:[#allocation12 + $0x1a8] sm:$0xff] }
 0x46e   : > { %3035 = vmatprep.subr.bf16.mxu0 %v3034_v21  ;;  %v3114_v19 = vpack.c.bf16 %v2194_v18, %v2193_v17 }
 0x51f   : > { %v2624_v5 = vpop.f32.mrb[8].mxu0  ;;  %v3948_v22 = vpop.f32.mrb[24].mxu1 }
 0x520   : > { %v1632_v23 = vpop.f32.mrb[9].mxu0  ;;  %v1996_v24 = vpop.f32.mrb[25].mxu1 }
 0x523   : > { %v2631_v26 = vpop.f32.mrb[10].mxu0  ;;  %v3950_v27 = vpop.f32.mrb[26].mxu1 }
 0x524   : > { %v1739_v28 = vpop.f32.mrb[11].mxu0  ;;  %v3952_v29 = vpop.f32.mrb[27].mxu1 }
 0x525   : > { %2664 = vmatprep.mubr.f32.mxu0 %v1739_v28  ;;  %v2201_v28 = vld [vmem:[#allocation12 + $0x1e0] sm:$0xff] }
 0x526   : > { %2665 = vmatmul.mubr.f32.vlgmr.msra.gmra.mrb[12].mxu0 %v2631_v26  ;;  %v2200_v26 = vld [vmem:[#allocation12 + $0x1d8] sm:$0xff] }
 0x527   : > { %3037 = vmatpush3.bf16.msra.mxu0 %v3034_v21  ;;  %2699 = vmatprep.mubr.f32.mxu0 %v1632_v23  ;;  %v2196_v21 = vld [vmem:[#allocation12 + $0x1b8] sm:$0xff]  ;;  %v2197_v23 = vld [vmem:[#allocation12 + $0x1c0] sm:$0xff] }
 0x528   : > { %3039 = vmatprep.subr.bf16.mxu0 %v3038_v30 }
 0x52b   : > { %3041 = vmatpush3.bf16.msra.mxu0 %v3038_v30 }
 0x52c   : > { %3043 = vmatprep.subr.bf16.mxu0 %v3042_v33 }
 0x52f   : > { %3045 = vmatpush3.bf16.msra.mxu0 %v3042_v33  ;;  %v3134_v33 = vpack.c.bf16 %v2204_v32, %v2203_v31 }
 0x530   : > { %3047 = vmatprep.subr.bf16.mxu0 %v3046_v36 }
 0x533   : > { %3049 = vmatpush3.bf16.msra.mxu0 %v3046_v36 }
 0x534   : > { %3051 = vmatprep.subr.bf16.mxu0 %v3050_v39 }
 0x537   : > { %3053 = vmatpush3.bf16.msra.mxu0 %v3050_v39 }
 0x538   : > { %3055 = vmatprep.subr.bf16.mxu0 %v3054_v10 }
 0x53b   : > { %3057 = vmatpush3.bf16.msra.mxu0 %v3054_v10 }
 0x53c   : > { %3059 = vmatprep.subr.bf16.mxu0 %v3058_v49 }
 0x53f   : > { %3061 = vmatpush3.bf16.msra.mxu0 %v3058_v49 }
 0x540   : > { %3063 = vmatprep.subr.bf16.mxu0 %v3062_v42 }
 0x543   : > { %3065 = vmatpush3.bf16.msra.mxu0 %v3062_v42 }
 0x544   : > { %3071 = vmatprep.subr.bf16.mxu0 %v3070_v52 }
 0x546   : > { %2700 = vmatmul.mubr.f32.vlgmr.msra.gmra.mrb[12].mxu0 %v2624_v5  ;;  %v3118_v5 = vpack.c.bf16 %v2196_v21, %v2195_v20 }
 0x547   : > { %3073 = vmatpush3.bf16.msra.mxu0 %v3070_v52  ;;  %2741 = vmatprep.mubr.f32.mxu0 %v1996_v24  ;;  %v2198_v24 = vld [vmem:[#allocation12 + $0x1c8] sm:$0xff] }
 0x548   : > { %3075 = vmatprep.subr.bf16.mxu0 %v3074_v47  ;;  %v3122_v6 = vpack.c.bf16 %v2198_v24, %v2197_v23 }
 0x54b   : > { %3077 = vmatpush3.bf16.msra.mxu0 %v3074_v47 }
 0x54c   : > { %3079 = vmatprep.subr.bf16.mxu0 %v3078_v51 }
 0x54f   : > { %3081 = vmatpush3.bf16.msra.mxu0 %v3078_v51 }
 0x550   : > { %3083 = vmatprep.subr.bf16.mxu0 %v3082_v59 }
 0x553   : > { %3085 = vmatpush3.bf16.msra.mxu0 %v3082_v59 }
 0x554   : > { %3087 = vmatprep.subr.bf16.mxu0 %v3086_v60 }
 0x557   : > { %3089 = vmatpush3.bf16.msra.mxu0 %v3086_v60 }
 0x558   : > { %3091 = vmatprep.subr.bf16.mxu0 %v3090_v56 }
 0x55b   : > { %3093 = vmatpush3.bf16.msra.mxu0 %v3090_v56 }
 0x55c   : > { %3095 = vmatprep.subr.bf16.mxu0 %v3094_v1 }
 0x55f   : > { %3097 = vmatpush3.bf16.msra.mxu0 %v3094_v1 }
 0x560   : > { %3099 = vmatprep.subr.bf16.mxu0 %v3098_v4 }
 0x563   : > { %3101 = vmatpush3.bf16.msra.mxu0 %v3098_v4 }
 0x564   : > { %3107 = vmatprep.subr.bf16.mxu0 %v3106_v13 }
 0x566   : > { %2742 = vmatmul.mubr.f32.vlgmr.msra.gmra.mrb[12].mxu0 %v3948_v22  ;;  %v3126_v22 = vpack.c.bf16 %v2200_v26, %v2199_v25 }
 0x567   : > { %3109 = vmatpush3.bf16.msra.mxu0 %v3106_v13  ;;  %2783 = vmatprep.mubr.f32.mxu0 %v3952_v29  ;;  %v2202_v29 = vld [vmem:[#allocation12 + $0x1e8] sm:$0xff] }
 0x568   : > { %3111 = vmatprep.subr.bf16.mxu0 %v3110_v16  ;;  %v3130_v30 = vpack.c.bf16 %v2202_v29, %v2201_v28 }
 0x56b   : > { %3113 = vmatpush3.bf16.msra.mxu0 %v3110_v16 }
 0x56c   : > { %3115 = vmatprep.subr.bf16.mxu0 %v3114_v19 }
 0x56f   : > { %3117 = vmatpush3.bf16.msra.mxu0 %v3114_v19 }
 0x570   : > { %3119 = vmatprep.subr.bf16.mxu0 %v3118_v5 }
 0x573   : > { %3121 = vmatpush3.bf16.msra.mxu0 %v3118_v5 }
 0x574   : > { %3123 = vmatprep.subr.bf16.mxu0 %v3122_v6 }
 0x577   : > { %3125 = vmatpush3.bf16.msra.mxu0 %v3122_v6 }
 0x578   : > { %3127 = vmatprep.subr.bf16.mxu0 %v3126_v22 }
 0x57b   : > { %3129 = vmatpush3.bf16.msra.mxu0 %v3126_v22 }
 0x57c   : > { %3131 = vmatprep.subr.bf16.mxu0 %v3130_v30 }
 0x57f   : > { %3133 = vmatpush3.bf16.msra.mxu0 %v3130_v30 }
 0x580   : > { %3135 = vmatprep.subr.bf16.mxu0 %v3134_v33 }
 0x583   : > { %3137 = vmatpush3.bf16.msra.mxu0 %v3134_v33 }
 0x586   : > { %2784 = vmatmul.mubr.f32.vlgmr.msra.gmra.mrb[12].mxu0 %v3950_v27 }
 0x659   : > { %v2785_v35 = vpop.f32.mrb[12].mxu0 }
 0x65a   : > { %v2290_v36 = vadd.f32 %v2785_v35, %v2478_v34  ;;  %v2271_v37 = vpop.f32.mrb[13].mxu0 }
 0x65b   : > { %v2289_v27 = vadd.f32 %v2478_v34, %v2271_v37 }
 0x65c   : > { %2292 = vst [vmem:[%s364_s14 + $0x8] sm:$0xff] %v2290_v36 }
 0x65d   : > { %2291 = vst [vmem:[%s364_s14] sm:$0xff] %v2289_v27 }
 0x65e   : > { %3428 = shalt.err (!%p3425_p7)
}
 0x65f   : > { %s3429_s28 = scalar_lea.hbm %s3968_s0, 256  ;;  %s3433_s15 = scalar_lea.hbm %s4019_s7, 512 }
 0x660   : > { %p3430_p9 = scmp.ne.s32.totalorder %s3968_s0, %s3429_s28  ;;  %p3434_p2 = scmp.lt.u32.totalorder %s3968_s0, %s4019_s7 }
 0x661   : > { %p3435_p0 = scmp.lt.u32.totalorder %s3433_s15, %s3429_s28  ;;  %p3437_p10 = scmp.lt.u32.totalorder %s3429_s28, %s3968_s0 }
 0x662   : > { %p3431_p8 = pnand %p3430_p9, %p4050_p3 }
 0x663   : > { %p3436_p5 = por %p3435_p0, %p3434_p2 }
 0x664   : > { %p3432_p13 = pneg %p3431_p8 }
 0x665   : > { %p3438_p11 = por %p3437_p10, %p3436_p5 }
 0x667   : > { %p3439_p12 = pnand %p3438_p11, %p3432_p13 }
 0x669   : > { %3442 = shalt.err (!%p3439_p12)
}
 0x66a   : > { %s3511_s18 = smov 128   ;;  %s3512_s22 = smov 8  }
 0x66b   : > { %3166 = dma.vmem_to_hbm [thread:$0]  (%p4050_p3), %s3963_s20, 256, %s3968_s0, %s2294_s1, %s3511_s18, %s3511_s18, %s3512_s22  }
 0x66c PF: > { %s2322_s17 = sand.u32 1, %s3485_s24   ;;  %p4051_p4 = scmp.ne.s32.totalorder %s4036_s19, 0 }
 0x66d   : > { %p4052_p1 = scmp.ge.s32.totalorder %s3497_s27, 2  ;;  %s2323_s11 = scalar_lea.sflag [#allocation4], %s2322_s17 }
 0x66f   : > { %p3189_p6 = pnand %p4052_p1, %p4051_p4 }
 0x671   : > { %3480 = dma.done.wait (!%p3189_p6), %s2323_s11, 256  }
 0x672   : > { %3482 = vsyncadd (!%p3189_p6), %s2323_s11, 4294967040  ;;  %p23_p7 = scmp.ge.s32.totalorder %s3685_s10, 4   ;;  %s4053_s24 = smov %s3489_s25 }
 0x673   : > { %s4054_s25 = smov %s3493_s26  ;;  %s4055_s26 = smov %s3697_s12 }
 0x674   : > { %s4056_s27 = smov %s3685_s10  ;;  %25 = sbr.rel (!%p23_p7) target bundleno = 12 (0xc), region = 114 }
 0x67b   :  { %2328 = vsyncpa [#allocation3], 1 }
 0x67c   :  { %2330 = vsyncpa [#allocation3 + $0x1], 1 }
 0x67d   :  { %2331 = vsyncpa [#allocation7], 1 }
 0x67e   :  { %2332 = vsyncpa [#allocation4], 1 }
 0x67f   :  { %2334 = vsyncpa [#allocation4 + $0x1], 1 }
 0x680   :  { %2335 = vsyncpa [#allocation5], 1 }
 0x681   :  { %2337 = vsyncpa [#allocation5 + $0x1], 1 }
 0x682   :  { %2338 = vsyncpa [#allocation10], 1 }

</bundles_post_ra>
